<compile_context>
chip_gen: v5e
topology: v5e:2x2
jax: 0.10.0
libtpu: 0.0.40
codegen_flags: <defaults>
</compile_context>

<pallas_src>
import jax
import jax.numpy as jnp
from jax.experimental import pallas as pl
from jax.experimental.pallas import tpu as pltpu


def make_lstm_decoder_kernel(B, T, H, L, O, n_layers):
    """Builds a Pallas kernel computing the full LSTMDecoder forward pass."""

    def kernel(*refs):
        idx = 0
        latent_ref = refs[idx]; idx += 1          # (B, L)      f32
        wl2h_ref = refs[idx]; idx += 1            # (L, H)      bf16
        bl2h_ref = refs[idx]; idx += 1            # (1, H)      f32
        layer_refs = []
        for l in range(n_layers):
            if l == 0:
                w_ih = None                       # zero-input path: W_ih_0 unused
            else:
                w_ih = refs[idx]; idx += 1        # (H, 4H)     bf16, gate-permuted
            w_hh = refs[idx]; idx += 1            # (H, 4H)     bf16, gate-permuted
            b = refs[idx]; idx += 1               # (1, 4H)     f32, fused b_ih + b_hh
            layer_refs.append((w_ih, w_hh, b))
        wproj_ref = refs[idx]; idx += 1           # (T*H, T*O)  bf16, block-diagonal W_h2o
        bproj_ref = refs[idx]; idx += 1           # (1, T*O)    f32, tiled output bias
        out_ref = refs[idx]                       # (B, T*O)    f32

        # h_state = latent_to_hidden(latent); h_0 = n_layers copies; c_0 = zeros.
        h_init = (
            jnp.dot(latent_ref[...].astype(jnp.bfloat16), wl2h_ref[...],
                    preferred_element_type=jnp.float32)
            + bl2h_ref[...]
        )
        h = [h_init for _ in range(n_layers)]
        c = [jnp.zeros((B, H), jnp.float32) for _ in range(n_layers)]

        h_last = []
        # Fully unrolled static time / layer loops (T, n_layers small).
        for _t in range(T):
            x = None
            for l in range(n_layers):
                w_ih_ref, w_hh_ref, b_ref = layer_refs[l]
                # Recurrent term depends only on h[l] from the PREVIOUS step, so the
                # scheduler can issue this dot before layer l-1 of this step finishes.
                rec = (
                    jnp.dot(h[l].astype(jnp.bfloat16), w_hh_ref[...],
                            preferred_element_type=jnp.float32)
                    + b_ref[...]
                )
                if l == 0:
                    # Decoder input is zeros -> x @ W_ih == 0.
                    gates = rec
                else:
                    gates = rec + jnp.dot(x.astype(jnp.bfloat16), w_ih_ref[...],
                                          preferred_element_type=jnp.float32)
                # Gate columns pre-permuted to [i, f, o, g]: one sigmoid, one tanh.
                sig = jax.nn.sigmoid(gates[:, : 3 * H])              # i | f | o
                g_g = jnp.tanh(gates[:, 3 * H :])                    # g
                i_g = sig[:, :H]
                f_g = sig[:, H : 2 * H]
                o_g = sig[:, 2 * H : 3 * H]
                c[l] = f_g * c[l] + i_g * g_g
                h[l] = o_g * jnp.tanh(c[l])
                x = h[l]
            h_last.append(h[-1])

        # Hoisted output projection: one matmul + one lane-dense store.
        h_hist = jnp.concatenate(h_last, axis=1).astype(jnp.bfloat16)   # (B, T*H)
        out_ref[...] = (
            jnp.dot(h_hist, wproj_ref[...], preferred_element_type=jnp.float32)
            + bproj_ref[...]
        )

    return kernel


def prepare_kernel_params(params, *, H, O, T, n_layers):
    """One-time wrapper-side param prep: gate permutation, bias fusion, bf16 weights,
    block-diagonal output projection. Pure layout/precision plumbing."""
    perm = jnp.concatenate(
        [
            jnp.arange(0 * H, 1 * H),   # i
            jnp.arange(1 * H, 2 * H),   # f
            jnp.arange(3 * H, 4 * H),   # o
            jnp.arange(2 * H, 3 * H),   # g
        ]
    )
    prepped = {
        "w_l2h": params["w_l2h"].astype(jnp.bfloat16),
        "b_l2h": params["b_l2h"].astype(jnp.float32),
    }
    for l in range(n_layers):
        prepped[f"w_hh_{l}"] = params[f"w_hh_{l}"][:, perm].astype(jnp.bfloat16)
        if l > 0:
            prepped[f"w_ih_{l}"] = params[f"w_ih_{l}"][:, perm].astype(jnp.bfloat16)
        prepped[f"b_{l}"] = (
            (params[f"b_ih_{l}"] + params[f"b_hh_{l}"])[:, perm].astype(jnp.float32)
        )
    # Block-diagonal output projection so the whole (B, T*H) history projects in one dot.
    w_blk = jnp.zeros((T * H, T * O), jnp.float32)
    for t in range(T):
        w_blk = w_blk.at[t * H : (t + 1) * H, t * O : (t + 1) * O].set(params["w_h2o"])
    prepped["w_proj"] = w_blk.astype(jnp.bfloat16)
    prepped["b_proj"] = jnp.tile(params["b_h2o"], (1, T)).astype(jnp.float32)  # (1, T*O)
    return prepped


def lstm_decoder_forward(latent, kparams, *, B, T, H, L, O, n_layers):
    """Wrapper: packs prepared params and calls the Pallas kernel."""
    args = [latent, kparams["w_l2h"], kparams["b_l2h"]]
    for l in range(n_layers):
        if l > 0:
            args.append(kparams[f"w_ih_{l}"])
        args.append(kparams[f"w_hh_{l}"])
        args.append(kparams[f"b_{l}"])
    args += [kparams["w_proj"], kparams["b_proj"]]

    kernel = make_lstm_decoder_kernel(B, T, H, L, O, n_layers)
    out_flat = pl.pallas_call(
        kernel,
        out_shape=jax.ShapeDtypeStruct((B, T * O), jnp.float32),
        in_specs=[pl.BlockSpec(memory_space=pltpu.MemorySpace.VMEM)] * len(args),
        out_specs=pl.BlockSpec(memory_space=pltpu.MemorySpace.VMEM),
    )(*args)
    # (B, T*O) -> (B, T, O) is a contiguous row-major reshape (free).
    return out_flat.reshape(B, T, O)


def reference_forward(latent, params, *, B, T, H, L, O, n_layers):
    """Pure-JAX f32 reference with identical semantics to the PyTorch module."""
    h_init = latent @ params["w_l2h"] + params["b_l2h"]
    h = [h_init for _ in range(n_layers)]
    c = [jnp.zeros((B, H), jnp.float32) for _ in range(n_layers)]
    outs = []
    x_seq = jnp.zeros((B, T, 1), jnp.float32)
    for t in range(T):
        x = x_seq[:, t, :]
        for l in range(n_layers):
            gates = (
                x @ params[f"w_ih_{l}"]
                + params[f"b_ih_{l}"]
                + h[l] @ params[f"w_hh_{l}"]
                + params[f"b_hh_{l}"]
            )
            i_g = jax.nn.sigmoid(gates[:, 0 * H : 1 * H])
            f_g = jax.nn.sigmoid(gates[:, 1 * H : 2 * H])
            g_g = jnp.tanh(gates[:, 2 * H : 3 * H])
            o_g = jax.nn.sigmoid(gates[:, 3 * H : 4 * H])
            c[l] = f_g * c[l] + i_g * g_g
            h[l] = o_g * jnp.tanh(c[l])
            x = h[l]
        outs.append(h[-1] @ params["w_h2o"] + params["b_h2o"])
    return jnp.stack(outs, axis=1)


def init_params(key, *, H, L, O, n_layers):
    """Deterministic synthetic init (shapes match nn.LSTM / nn.Linear, pre-transposed;
    LSTM gate order [i, f, g, o] like PyTorch)."""
    params = {}
    ks = jax.random.split(key, 4 + 4 * n_layers)
    k_it = iter(ks)
    scale = 1.0 / jnp.sqrt(jnp.float32(H))
    params["w_l2h"] = jax.random.uniform(next(k_it), (L, H), jnp.float32, -scale, scale)
    params["b_l2h"] = jax.random.uniform(next(k_it), (1, H), jnp.float32, -scale, scale)
    params["w_h2o"] = jax.random.uniform(next(k_it), (H, O), jnp.float32, -scale, scale)
    params["b_h2o"] = jax.random.uniform(next(k_it), (1, O), jnp.float32, -scale, scale)
    for l in range(n_layers):
        in_dim = 1 if l == 0 else H
        params[f"w_ih_{l}"] = jax.random.uniform(
            next(k_it), (in_dim, 4 * H), jnp.float32, -scale, scale
        )
        params[f"w_hh_{l}"] = jax.random.uniform(
            next(k_it), (H, 4 * H), jnp.float32, -scale, scale
        )
        params[f"b_ih_{l}"] = jax.random.uniform(
            next(k_it), (1, 4 * H), jnp.float32, -scale, scale
        )
        params[f"b_hh_{l}"] = jax.random.uniform(
            next(k_it), (1, 4 * H), jnp.float32, -scale, scale
        )
    return params


if __name__ == "__main__":
    # Small shapes consistent with the module's forward.
    B, T, H, L, O, N_LAYERS = 2, 8, 32, 16, 4, 2

    key = jax.random.PRNGKey(0)
    k_lat, k_params = jax.random.split(key)
    latent = jax.random.normal(k_lat, (B, L), jnp.float32)
    params = init_params(k_params, H=H, L=L, O=O, n_layers=N_LAYERS)
    kparams = prepare_kernel_params(params, H=H, O=O, T=T, n_layers=N_LAYERS)

    out = lstm_decoder_forward(latent, kparams, B=B, T=T, H=H, L=L, O=O, n_layers=N_LAYERS)
    out = jax.block_until_ready(out)

    ref = reference_forward(latent, params, B=B, T=T, H=H, L=L, O=O, n_layers=N_LAYERS)
    assert out.shape == (B, T, O)
    # Tolerance loosened vs. the f32-exact version: matmul operands are bf16
    # (f32 accumulation / f32 state), per the performance review.
    assert jnp.allclose(out, ref, atol=2e-2, rtol=2e-2), float(jnp.max(jnp.abs(out - ref)))

    print("KERNEL_OK")
</pallas_src>

<mosaic_0001>
module attributes {stable_mosaic.version = 11 : i64} {
  func.func @kernel(%arg0: memref<2x16xf32, #tpu.memory_space<vmem>>, %arg1: memref<16x32xbf16, #tpu.memory_space<vmem>>, %arg2: memref<1x32xf32, #tpu.memory_space<vmem>>, %arg3: memref<32x128xbf16, #tpu.memory_space<vmem>>, %arg4: memref<1x128xf32, #tpu.memory_space<vmem>>, %arg5: memref<32x128xbf16, #tpu.memory_space<vmem>>, %arg6: memref<32x128xbf16, #tpu.memory_space<vmem>>, %arg7: memref<1x128xf32, #tpu.memory_space<vmem>>, %arg8: memref<256x32xbf16, #tpu.memory_space<vmem>>, %arg9: memref<1x32xf32, #tpu.memory_space<vmem>>, %arg10: memref<2x32xf32, #tpu.memory_space<vmem>>) attributes {dimension_semantics = [], scalar_prefetch = 0 : i64, scratch_operands = 0 : i64, tpu.core_type = #tpu.core_type<tc>} {
    %c0 = arith.constant 0 : index
    %c0_0 = arith.constant 0 : index
    %0 = vector.load %arg0[%c0, %c0_0] : memref<2x16xf32, #tpu.memory_space<vmem>>, vector<2x16xf32>
    %1 = arith.truncf %0 : vector<2x16xf32> to vector<2x16xbf16>
    %c0_1 = arith.constant 0 : index
    %c0_2 = arith.constant 0 : index
    %2 = vector.load %arg1[%c0_1, %c0_2] : memref<16x32xbf16, #tpu.memory_space<vmem>>, vector<16x32xbf16>
    %cst = arith.constant dense<0.000000e+00> : vector<2x32xf32>
    %3 = tpu.matmul %1, %2, %cst {dimension_numbers = #tpu.dot_dimension_numbers<[1], [0], [0], [1], [0, 0, 1, 1], [], []>} : vector<2x16xbf16>, vector<16x32xbf16>, vector<2x32xf32> -> vector<2x32xf32>
    %c0_3 = arith.constant 0 : index
    %c0_4 = arith.constant 0 : index
    %4 = vector.load %arg2[%c0_3, %c0_4] : memref<1x32xf32, #tpu.memory_space<vmem>>, vector<1x32xf32>
    %5 = vector.broadcast %4 : vector<1x32xf32> to vector<2x32xf32>
    %6 = arith.addf %3, %5 : vector<2x32xf32>
    %cst_5 = arith.constant 0.000000e+00 : f32
    %7 = vector.broadcast %cst_5 : f32 to vector<2x32xf32>
    %cst_6 = arith.constant 0.000000e+00 : f32
    %8 = vector.broadcast %cst_6 : f32 to vector<2x32xf32>
    %9 = arith.truncf %6 : vector<2x32xf32> to vector<2x32xbf16>
    %c0_7 = arith.constant 0 : index
    %c0_8 = arith.constant 0 : index
    %10 = vector.load %arg3[%c0_7, %c0_8] : memref<32x128xbf16, #tpu.memory_space<vmem>>, vector<32x128xbf16>
    %cst_9 = arith.constant dense<0.000000e+00> : vector<2x128xf32>
    %11 = tpu.matmul %9, %10, %cst_9 {dimension_numbers = #tpu.dot_dimension_numbers<[1], [0], [0], [1], [0, 0, 1, 1], [], []>} : vector<2x32xbf16>, vector<32x128xbf16>, vector<2x128xf32> -> vector<2x128xf32>
    %c0_10 = arith.constant 0 : index
    %c0_11 = arith.constant 0 : index
    %12 = vector.load %arg4[%c0_10, %c0_11] : memref<1x128xf32, #tpu.memory_space<vmem>>, vector<1x128xf32>
    %13 = vector.broadcast %12 : vector<1x128xf32> to vector<2x128xf32>
    %14 = arith.addf %11, %13 : vector<2x128xf32>
    %15 = vector.extract_strided_slice %14 {offsets = [0, 0], sizes = [2, 96], strides = [1, 1]} : vector<2x128xf32> to vector<2x96xf32>
    %16 = arith.negf %15 : vector<2x96xf32>
    %17 = math.exp %16 : vector<2x96xf32>
    %cst_12 = arith.constant 1.000000e+00 : f32
    %18 = vector.broadcast %cst_12 : f32 to vector<2x96xf32>
    %19 = arith.addf %18, %17 : vector<2x96xf32>
    %20 = arith.divf %18, %19 : vector<2x96xf32>
    %21 = vector.extract_strided_slice %14 {offsets = [0, 96], sizes = [2, 32], strides = [1, 1]} : vector<2x128xf32> to vector<2x32xf32>
    %22 = math.tanh %21 : vector<2x32xf32>
    %23 = vector.extract_strided_slice %20 {offsets = [0, 0], sizes = [2, 32], strides = [1, 1]} : vector<2x96xf32> to vector<2x32xf32>
    %24 = vector.extract_strided_slice %20 {offsets = [0, 32], sizes = [2, 32], strides = [1, 1]} : vector<2x96xf32> to vector<2x32xf32>
    %25 = vector.extract_strided_slice %20 {offsets = [0, 64], sizes = [2, 32], strides = [1, 1]} : vector<2x96xf32> to vector<2x32xf32>
    %26 = arith.mulf %24, %7 : vector<2x32xf32>
    %27 = arith.mulf %23, %22 : vector<2x32xf32>
    %28 = arith.addf %26, %27 : vector<2x32xf32>
    %29 = math.tanh %28 : vector<2x32xf32>
    %30 = arith.mulf %25, %29 : vector<2x32xf32>
    %31 = arith.truncf %6 : vector<2x32xf32> to vector<2x32xbf16>
    %c0_13 = arith.constant 0 : index
    %c0_14 = arith.constant 0 : index
    %32 = vector.load %arg6[%c0_13, %c0_14] : memref<32x128xbf16, #tpu.memory_space<vmem>>, vector<32x128xbf16>
    %cst_15 = arith.constant dense<0.000000e+00> : vector<2x128xf32>
    %33 = tpu.matmul %31, %32, %cst_15 {dimension_numbers = #tpu.dot_dimension_numbers<[1], [0], [0], [1], [0, 0, 1, 1], [], []>} : vector<2x32xbf16>, vector<32x128xbf16>, vector<2x128xf32> -> vector<2x128xf32>
    %c0_16 = arith.constant 0 : index
    %c0_17 = arith.constant 0 : index
    %34 = vector.load %arg7[%c0_16, %c0_17] : memref<1x128xf32, #tpu.memory_space<vmem>>, vector<1x128xf32>
    %35 = vector.broadcast %34 : vector<1x128xf32> to vector<2x128xf32>
    %36 = arith.addf %33, %35 : vector<2x128xf32>
    %37 = arith.truncf %30 : vector<2x32xf32> to vector<2x32xbf16>
    %c0_18 = arith.constant 0 : index
    %c0_19 = arith.constant 0 : index
    %38 = vector.load %arg5[%c0_18, %c0_19] : memref<32x128xbf16, #tpu.memory_space<vmem>>, vector<32x128xbf16>
    %cst_20 = arith.constant dense<0.000000e+00> : vector<2x128xf32>
    %39 = tpu.matmul %37, %38, %cst_20 {dimension_numbers = #tpu.dot_dimension_numbers<[1], [0], [0], [1], [0, 0, 1, 1], [], []>} : vector<2x32xbf16>, vector<32x128xbf16>, vector<2x128xf32> -> vector<2x128xf32>
    %40 = arith.addf %36, %39 : vector<2x128xf32>
    %41 = vector.extract_strided_slice %40 {offsets = [0, 0], sizes = [2, 96], strides = [1, 1]} : vector<2x128xf32> to vector<2x96xf32>
    %42 = arith.negf %41 : vector<2x96xf32>
    %43 = math.exp %42 : vector<2x96xf32>
    %cst_21 = arith.constant 1.000000e+00 : f32
    %44 = vector.broadcast %cst_21 : f32 to vector<2x96xf32>
    %45 = arith.addf %44, %43 : vector<2x96xf32>
    %46 = arith.divf %44, %45 : vector<2x96xf32>
    %47 = vector.extract_strided_slice %40 {offsets = [0, 96], sizes = [2, 32], strides = [1, 1]} : vector<2x128xf32> to vector<2x32xf32>
    %48 = math.tanh %47 : vector<2x32xf32>
    %49 = vector.extract_strided_slice %46 {offsets = [0, 0], sizes = [2, 32], strides = [1, 1]} : vector<2x96xf32> to vector<2x32xf32>
    %50 = vector.extract_strided_slice %46 {offsets = [0, 32], sizes = [2, 32], strides = [1, 1]} : vector<2x96xf32> to vector<2x32xf32>
    %51 = vector.extract_strided_slice %46 {offsets = [0, 64], sizes = [2, 32], strides = [1, 1]} : vector<2x96xf32> to vector<2x32xf32>
    %52 = arith.mulf %50, %8 : vector<2x32xf32>
    %53 = arith.mulf %49, %48 : vector<2x32xf32>
    %54 = arith.addf %52, %53 : vector<2x32xf32>
    %55 = math.tanh %54 : vector<2x32xf32>
    %56 = arith.mulf %51, %55 : vector<2x32xf32>
    %57 = arith.truncf %30 : vector<2x32xf32> to vector<2x32xbf16>
    %c0_22 = arith.constant 0 : index
    %c0_23 = arith.constant 0 : index
    %58 = vector.load %arg3[%c0_22, %c0_23] : memref<32x128xbf16, #tpu.memory_space<vmem>>, vector<32x128xbf16>
    %cst_24 = arith.constant dense<0.000000e+00> : vector<2x128xf32>
    %59 = tpu.matmul %57, %58, %cst_24 {dimension_numbers = #tpu.dot_dimension_numbers<[1], [0], [0], [1], [0, 0, 1, 1], [], []>} : vector<2x32xbf16>, vector<32x128xbf16>, vector<2x128xf32> -> vector<2x128xf32>
    %c0_25 = arith.constant 0 : index
    %c0_26 = arith.constant 0 : index
    %60 = vector.load %arg4[%c0_25, %c0_26] : memref<1x128xf32, #tpu.memory_space<vmem>>, vector<1x128xf32>
    %61 = vector.broadcast %60 : vector<1x128xf32> to vector<2x128xf32>
    %62 = arith.addf %59, %61 : vector<2x128xf32>
    %63 = vector.extract_strided_slice %62 {offsets = [0, 0], sizes = [2, 96], strides = [1, 1]} : vector<2x128xf32> to vector<2x96xf32>
    %64 = arith.negf %63 : vector<2x96xf32>
    %65 = math.exp %64 : vector<2x96xf32>
    %cst_27 = arith.constant 1.000000e+00 : f32
    %66 = vector.broadcast %cst_27 : f32 to vector<2x96xf32>
    %67 = arith.addf %66, %65 : vector<2x96xf32>
    %68 = arith.divf %66, %67 : vector<2x96xf32>
    %69 = vector.extract_strided_slice %62 {offsets = [0, 96], sizes = [2, 32], strides = [1, 1]} : vector<2x128xf32> to vector<2x32xf32>
    %70 = math.tanh %69 : vector<2x32xf32>
    %71 = vector.extract_strided_slice %68 {offsets = [0, 0], sizes = [2, 32], strides = [1, 1]} : vector<2x96xf32> to vector<2x32xf32>
    %72 = vector.extract_strided_slice %68 {offsets = [0, 32], sizes = [2, 32], strides = [1, 1]} : vector<2x96xf32> to vector<2x32xf32>
    %73 = vector.extract_strided_slice %68 {offsets = [0, 64], sizes = [2, 32], strides = [1, 1]} : vector<2x96xf32> to vector<2x32xf32>
    %74 = arith.mulf %72, %28 : vector<2x32xf32>
    %75 = arith.mulf %71, %70 : vector<2x32xf32>
    %76 = arith.addf %74, %75 : vector<2x32xf32>
    %77 = math.tanh %76 : vector<2x32xf32>
    %78 = arith.mulf %73, %77 : vector<2x32xf32>
    %79 = arith.truncf %56 : vector<2x32xf32> to vector<2x32xbf16>
    %c0_28 = arith.constant 0 : index
    %c0_29 = arith.constant 0 : index
    %80 = vector.load %arg6[%c0_28, %c0_29] : memref<32x128xbf16, #tpu.memory_space<vmem>>, vector<32x128xbf16>
    %cst_30 = arith.constant dense<0.000000e+00> : vector<2x128xf32>
    %81 = tpu.matmul %79, %80, %cst_30 {dimension_numbers = #tpu.dot_dimension_numbers<[1], [0], [0], [1], [0, 0, 1, 1], [], []>} : vector<2x32xbf16>, vector<32x128xbf16>, vector<2x128xf32> -> vector<2x128xf32>
    %c0_31 = arith.constant 0 : index
    %c0_32 = arith.constant 0 : index
    %82 = vector.load %arg7[%c0_31, %c0_32] : memref<1x128xf32, #tpu.memory_space<vmem>>, vector<1x128xf32>
    %83 = vector.broadcast %82 : vector<1x128xf32> to vector<2x128xf32>
    %84 = arith.addf %81, %83 : vector<2x128xf32>
    %85 = arith.truncf %78 : vector<2x32xf32> to vector<2x32xbf16>
    %c0_33 = arith.constant 0 : index
    %c0_34 = arith.constant 0 : index
    %86 = vector.load %arg5[%c0_33, %c0_34] : memref<32x128xbf16, #tpu.memory_space<vmem>>, vector<32x128xbf16>
    %cst_35 = arith.constant dense<0.000000e+00> : vector<2x128xf32>
    %87 = tpu.matmul %85, %86, %cst_35 {dimension_numbers = #tpu.dot_dimension_numbers<[1], [0], [0], [1], [0, 0, 1, 1], [], []>} : vector<2x32xbf16>, vector<32x128xbf16>, vector<2x128xf32> -> vector<2x128xf32>
    %88 = arith.addf %84, %87 : vector<2x128xf32>
    %89 = vector.extract_strided_slice %88 {offsets = [0, 0], sizes = [2, 96], strides = [1, 1]} : vector<2x128xf32> to vector<2x96xf32>
    %90 = arith.negf %89 : vector<2x96xf32>
    %91 = math.exp %90 : vector<2x96xf32>
    %cst_36 = arith.constant 1.000000e+00 : f32
    %92 = vector.broadcast %cst_36 : f32 to vector<2x96xf32>
    %93 = arith.addf %92, %91 : vector<2x96xf32>
    %94 = arith.divf %92, %93 : vector<2x96xf32>
    %95 = vector.extract_strided_slice %88 {offsets = [0, 96], sizes = [2, 32], strides = [1, 1]} : vector<2x128xf32> to vector<2x32xf32>
    %96 = math.tanh %95 : vector<2x32xf32>
    %97 = vector.extract_strided_slice %94 {offsets = [0, 0], sizes = [2, 32], strides = [1, 1]} : vector<2x96xf32> to vector<2x32xf32>
    %98 = vector.extract_strided_slice %94 {offsets = [0, 32], sizes = [2, 32], strides = [1, 1]} : vector<2x96xf32> to vector<2x32xf32>
    %99 = vector.extract_strided_slice %94 {offsets = [0, 64], sizes = [2, 32], strides = [1, 1]} : vector<2x96xf32> to vector<2x32xf32>
    %100 = arith.mulf %98, %54 : vector<2x32xf32>
    %101 = arith.mulf %97, %96 : vector<2x32xf32>
    %102 = arith.addf %100, %101 : vector<2x32xf32>
    %103 = math.tanh %102 : vector<2x32xf32>
    %104 = arith.mulf %99, %103 : vector<2x32xf32>
    %105 = arith.truncf %78 : vector<2x32xf32> to vector<2x32xbf16>
    %c0_37 = arith.constant 0 : index
    %c0_38 = arith.constant 0 : index
    %106 = vector.load %arg3[%c0_37, %c0_38] : memref<32x128xbf16, #tpu.memory_space<vmem>>, vector<32x128xbf16>
    %cst_39 = arith.constant dense<0.000000e+00> : vector<2x128xf32>
    %107 = tpu.matmul %105, %106, %cst_39 {dimension_numbers = #tpu.dot_dimension_numbers<[1], [0], [0], [1], [0, 0, 1, 1], [], []>} : vector<2x32xbf16>, vector<32x128xbf16>, vector<2x128xf32> -> vector<2x128xf32>
    %c0_40 = arith.constant 0 : index
    %c0_41 = arith.constant 0 : index
    %108 = vector.load %arg4[%c0_40, %c0_41] : memref<1x128xf32, #tpu.memory_space<vmem>>, vector<1x128xf32>
    %109 = vector.broadcast %108 : vector<1x128xf32> to vector<2x128xf32>
    %110 = arith.addf %107, %109 : vector<2x128xf32>
    %111 = vector.extract_strided_slice %110 {offsets = [0, 0], sizes = [2, 96], strides = [1, 1]} : vector<2x128xf32> to vector<2x96xf32>
    %112 = arith.negf %111 : vector<2x96xf32>
    %113 = math.exp %112 : vector<2x96xf32>
    %cst_42 = arith.constant 1.000000e+00 : f32
    %114 = vector.broadcast %cst_42 : f32 to vector<2x96xf32>
    %115 = arith.addf %114, %113 : vector<2x96xf32>
    %116 = arith.divf %114, %115 : vector<2x96xf32>
    %117 = vector.extract_strided_slice %110 {offsets = [0, 96], sizes = [2, 32], strides = [1, 1]} : vector<2x128xf32> to vector<2x32xf32>
    %118 = math.tanh %117 : vector<2x32xf32>
    %119 = vector.extract_strided_slice %116 {offsets = [0, 0], sizes = [2, 32], strides = [1, 1]} : vector<2x96xf32> to vector<2x32xf32>
    %120 = vector.extract_strided_slice %116 {offsets = [0, 32], sizes = [2, 32], strides = [1, 1]} : vector<2x96xf32> to vector<2x32xf32>
    %121 = vector.extract_strided_slice %116 {offsets = [0, 64], sizes = [2, 32], strides = [1, 1]} : vector<2x96xf32> to vector<2x32xf32>
    %122 = arith.mulf %120, %76 : vector<2x32xf32>
    %123 = arith.mulf %119, %118 : vector<2x32xf32>
    %124 = arith.addf %122, %123 : vector<2x32xf32>
    %125 = math.tanh %124 : vector<2x32xf32>
    %126 = arith.mulf %121, %125 : vector<2x32xf32>
    %127 = arith.truncf %104 : vector<2x32xf32> to vector<2x32xbf16>
    %c0_43 = arith.constant 0 : index
    %c0_44 = arith.constant 0 : index
    %128 = vector.load %arg6[%c0_43, %c0_44] : memref<32x128xbf16, #tpu.memory_space<vmem>>, vector<32x128xbf16>
    %cst_45 = arith.constant dense<0.000000e+00> : vector<2x128xf32>
    %129 = tpu.matmul %127, %128, %cst_45 {dimension_numbers = #tpu.dot_dimension_numbers<[1], [0], [0], [1], [0, 0, 1, 1], [], []>} : vector<2x32xbf16>, vector<32x128xbf16>, vector<2x128xf32> -> vector<2x128xf32>
    %c0_46 = arith.constant 0 : index
    %c0_47 = arith.constant 0 : index
    %130 = vector.load %arg7[%c0_46, %c0_47] : memref<1x128xf32, #tpu.memory_space<vmem>>, vector<1x128xf32>
    %131 = vector.broadcast %130 : vector<1x128xf32> to vector<2x128xf32>
    %132 = arith.addf %129, %131 : vector<2x128xf32>
    %133 = arith.truncf %126 : vector<2x32xf32> to vector<2x32xbf16>
    %c0_48 = arith.constant 0 : index
    %c0_49 = arith.constant 0 : index
    %134 = vector.load %arg5[%c0_48, %c0_49] : memref<32x128xbf16, #tpu.memory_space<vmem>>, vector<32x128xbf16>
    %cst_50 = arith.constant dense<0.000000e+00> : vector<2x128xf32>
    %135 = tpu.matmul %133, %134, %cst_50 {dimension_numbers = #tpu.dot_dimension_numbers<[1], [0], [0], [1], [0, 0, 1, 1], [], []>} : vector<2x32xbf16>, vector<32x128xbf16>, vector<2x128xf32> -> vector<2x128xf32>
    %136 = arith.addf %132, %135 : vector<2x128xf32>
    %137 = vector.extract_strided_slice %136 {offsets = [0, 0], sizes = [2, 96], strides = [1, 1]} : vector<2x128xf32> to vector<2x96xf32>
    %138 = arith.negf %137 : vector<2x96xf32>
    %139 = math.exp %138 : vector<2x96xf32>
    %cst_51 = arith.constant 1.000000e+00 : f32
    %140 = vector.broadcast %cst_51 : f32 to vector<2x96xf32>
    %141 = arith.addf %140, %139 : vector<2x96xf32>
    %142 = arith.divf %140, %141 : vector<2x96xf32>
    %143 = vector.extract_strided_slice %136 {offsets = [0, 96], sizes = [2, 32], strides = [1, 1]} : vector<2x128xf32> to vector<2x32xf32>
    %144 = math.tanh %143 : vector<2x32xf32>
    %145 = vector.extract_strided_slice %142 {offsets = [0, 0], sizes = [2, 32], strides = [1, 1]} : vector<2x96xf32> to vector<2x32xf32>
    %146 = vector.extract_strided_slice %142 {offsets = [0, 32], sizes = [2, 32], strides = [1, 1]} : vector<2x96xf32> to vector<2x32xf32>
    %147 = vector.extract_strided_slice %142 {offsets = [0, 64], sizes = [2, 32], strides = [1, 1]} : vector<2x96xf32> to vector<2x32xf32>
    %148 = arith.mulf %146, %102 : vector<2x32xf32>
    %149 = arith.mulf %145, %144 : vector<2x32xf32>
    %150 = arith.addf %148, %149 : vector<2x32xf32>
    %151 = math.tanh %150 : vector<2x32xf32>
    %152 = arith.mulf %147, %151 : vector<2x32xf32>
    %153 = arith.truncf %126 : vector<2x32xf32> to vector<2x32xbf16>
    %c0_52 = arith.constant 0 : index
    %c0_53 = arith.constant 0 : index
    %154 = vector.load %arg3[%c0_52, %c0_53] : memref<32x128xbf16, #tpu.memory_space<vmem>>, vector<32x128xbf16>
    %cst_54 = arith.constant dense<0.000000e+00> : vector<2x128xf32>
    %155 = tpu.matmul %153, %154, %cst_54 {dimension_numbers = #tpu.dot_dimension_numbers<[1], [0], [0], [1], [0, 0, 1, 1], [], []>} : vector<2x32xbf16>, vector<32x128xbf16>, vector<2x128xf32> -> vector<2x128xf32>
    %c0_55 = arith.constant 0 : index
    %c0_56 = arith.constant 0 : index
    %156 = vector.load %arg4[%c0_55, %c0_56] : memref<1x128xf32, #tpu.memory_space<vmem>>, vector<1x128xf32>
    %157 = vector.broadcast %156 : vector<1x128xf32> to vector<2x128xf32>
    %158 = arith.addf %155, %157 : vector<2x128xf32>
    %159 = vector.extract_strided_slice %158 {offsets = [0, 0], sizes = [2, 96], strides = [1, 1]} : vector<2x128xf32> to vector<2x96xf32>
    %160 = arith.negf %159 : vector<2x96xf32>
    %161 = math.exp %160 : vector<2x96xf32>
    %cst_57 = arith.constant 1.000000e+00 : f32
    %162 = vector.broadcast %cst_57 : f32 to vector<2x96xf32>
    %163 = arith.addf %162, %161 : vector<2x96xf32>
    %164 = arith.divf %162, %163 : vector<2x96xf32>
    %165 = vector.extract_strided_slice %158 {offsets = [0, 96], sizes = [2, 32], strides = [1, 1]} : vector<2x128xf32> to vector<2x32xf32>
    %166 = math.tanh %165 : vector<2x32xf32>
    %167 = vector.extract_strided_slice %164 {offsets = [0, 0], sizes = [2, 32], strides = [1, 1]} : vector<2x96xf32> to vector<2x32xf32>
    %168 = vector.extract_strided_slice %164 {offsets = [0, 32], sizes = [2, 32], strides = [1, 1]} : vector<2x96xf32> to vector<2x32xf32>
    %169 = vector.extract_strided_slice %164 {offsets = [0, 64], sizes = [2, 32], strides = [1, 1]} : vector<2x96xf32> to vector<2x32xf32>
    %170 = arith.mulf %168, %124 : vector<2x32xf32>
    %171 = arith.mulf %167, %166 : vector<2x32xf32>
    %172 = arith.addf %170, %171 : vector<2x32xf32>
    %173 = math.tanh %172 : vector<2x32xf32>
    %174 = arith.mulf %169, %173 : vector<2x32xf32>
    %175 = arith.truncf %152 : vector<2x32xf32> to vector<2x32xbf16>
    %c0_58 = arith.constant 0 : index
    %c0_59 = arith.constant 0 : index
    %176 = vector.load %arg6[%c0_58, %c0_59] : memref<32x128xbf16, #tpu.memory_space<vmem>>, vector<32x128xbf16>
    %cst_60 = arith.constant dense<0.000000e+00> : vector<2x128xf32>
    %177 = tpu.matmul %175, %176, %cst_60 {dimension_numbers = #tpu.dot_dimension_numbers<[1], [0], [0], [1], [0, 0, 1, 1], [], []>} : vector<2x32xbf16>, vector<32x128xbf16>, vector<2x128xf32> -> vector<2x128xf32>
    %c0_61 = arith.constant 0 : index
    %c0_62 = arith.constant 0 : index
    %178 = vector.load %arg7[%c0_61, %c0_62] : memref<1x128xf32, #tpu.memory_space<vmem>>, vector<1x128xf32>
    %179 = vector.broadcast %178 : vector<1x128xf32> to vector<2x128xf32>
    %180 = arith.addf %177, %179 : vector<2x128xf32>
    %181 = arith.truncf %174 : vector<2x32xf32> to vector<2x32xbf16>
    %c0_63 = arith.constant 0 : index
    %c0_64 = arith.constant 0 : index
    %182 = vector.load %arg5[%c0_63, %c0_64] : memref<32x128xbf16, #tpu.memory_space<vmem>>, vector<32x128xbf16>
    %cst_65 = arith.constant dense<0.000000e+00> : vector<2x128xf32>
    %183 = tpu.matmul %181, %182, %cst_65 {dimension_numbers = #tpu.dot_dimension_numbers<[1], [0], [0], [1], [0, 0, 1, 1], [], []>} : vector<2x32xbf16>, vector<32x128xbf16>, vector<2x128xf32> -> vector<2x128xf32>
    %184 = arith.addf %180, %183 : vector<2x128xf32>
    %185 = vector.extract_strided_slice %184 {offsets = [0, 0], sizes = [2, 96], strides = [1, 1]} : vector<2x128xf32> to vector<2x96xf32>
    %186 = arith.negf %185 : vector<2x96xf32>
    %187 = math.exp %186 : vector<2x96xf32>
    %cst_66 = arith.constant 1.000000e+00 : f32
    %188 = vector.broadcast %cst_66 : f32 to vector<2x96xf32>
    %189 = arith.addf %188, %187 : vector<2x96xf32>
    %190 = arith.divf %188, %189 : vector<2x96xf32>
    %191 = vector.extract_strided_slice %184 {offsets = [0, 96], sizes = [2, 32], strides = [1, 1]} : vector<2x128xf32> to vector<2x32xf32>
    %192 = math.tanh %191 : vector<2x32xf32>
    %193 = vector.extract_strided_slice %190 {offsets = [0, 0], sizes = [2, 32], strides = [1, 1]} : vector<2x96xf32> to vector<2x32xf32>
    %194 = vector.extract_strided_slice %190 {offsets = [0, 32], sizes = [2, 32], strides = [1, 1]} : vector<2x96xf32> to vector<2x32xf32>
    %195 = vector.extract_strided_slice %190 {offsets = [0, 64], sizes = [2, 32], strides = [1, 1]} : vector<2x96xf32> to vector<2x32xf32>
    %196 = arith.mulf %194, %150 : vector<2x32xf32>
    %197 = arith.mulf %193, %192 : vector<2x32xf32>
    %198 = arith.addf %196, %197 : vector<2x32xf32>
    %199 = math.tanh %198 : vector<2x32xf32>
    %200 = arith.mulf %195, %199 : vector<2x32xf32>
    %201 = arith.truncf %174 : vector<2x32xf32> to vector<2x32xbf16>
    %c0_67 = arith.constant 0 : index
    %c0_68 = arith.constant 0 : index
    %202 = vector.load %arg3[%c0_67, %c0_68] : memref<32x128xbf16, #tpu.memory_space<vmem>>, vector<32x128xbf16>
    %cst_69 = arith.constant dense<0.000000e+00> : vector<2x128xf32>
    %203 = tpu.matmul %201, %202, %cst_69 {dimension_numbers = #tpu.dot_dimension_numbers<[1], [0], [0], [1], [0, 0, 1, 1], [], []>} : vector<2x32xbf16>, vector<32x128xbf16>, vector<2x128xf32> -> vector<2x128xf32>
    %c0_70 = arith.constant 0 : index
    %c0_71 = arith.constant 0 : index
    %204 = vector.load %arg4[%c0_70, %c0_71] : memref<1x128xf32, #tpu.memory_space<vmem>>, vector<1x128xf32>
    %205 = vector.broadcast %204 : vector<1x128xf32> to vector<2x128xf32>
    %206 = arith.addf %203, %205 : vector<2x128xf32>
    %207 = vector.extract_strided_slice %206 {offsets = [0, 0], sizes = [2, 96], strides = [1, 1]} : vector<2x128xf32> to vector<2x96xf32>
    %208 = arith.negf %207 : vector<2x96xf32>
    %209 = math.exp %208 : vector<2x96xf32>
    %cst_72 = arith.constant 1.000000e+00 : f32
    %210 = vector.broadcast %cst_72 : f32 to vector<2x96xf32>
    %211 = arith.addf %210, %209 : vector<2x96xf32>
    %212 = arith.divf %210, %211 : vector<2x96xf32>
    %213 = vector.extract_strided_slice %206 {offsets = [0, 96], sizes = [2, 32], strides = [1, 1]} : vector<2x128xf32> to vector<2x32xf32>
    %214 = math.tanh %213 : vector<2x32xf32>
    %215 = vector.extract_strided_slice %212 {offsets = [0, 0], sizes = [2, 32], strides = [1, 1]} : vector<2x96xf32> to vector<2x32xf32>
    %216 = vector.extract_strided_slice %212 {offsets = [0, 32], sizes = [2, 32], strides = [1, 1]} : vector<2x96xf32> to vector<2x32xf32>
    %217 = vector.extract_strided_slice %212 {offsets = [0, 64], sizes = [2, 32], strides = [1, 1]} : vector<2x96xf32> to vector<2x32xf32>
    %218 = arith.mulf %216, %172 : vector<2x32xf32>
    %219 = arith.mulf %215, %214 : vector<2x32xf32>
    %220 = arith.addf %218, %219 : vector<2x32xf32>
    %221 = math.tanh %220 : vector<2x32xf32>
    %222 = arith.mulf %217, %221 : vector<2x32xf32>
    %223 = arith.truncf %200 : vector<2x32xf32> to vector<2x32xbf16>
    %c0_73 = arith.constant 0 : index
    %c0_74 = arith.constant 0 : index
    %224 = vector.load %arg6[%c0_73, %c0_74] : memref<32x128xbf16, #tpu.memory_space<vmem>>, vector<32x128xbf16>
    %cst_75 = arith.constant dense<0.000000e+00> : vector<2x128xf32>
    %225 = tpu.matmul %223, %224, %cst_75 {dimension_numbers = #tpu.dot_dimension_numbers<[1], [0], [0], [1], [0, 0, 1, 1], [], []>} : vector<2x32xbf16>, vector<32x128xbf16>, vector<2x128xf32> -> vector<2x128xf32>
    %c0_76 = arith.constant 0 : index
    %c0_77 = arith.constant 0 : index
    %226 = vector.load %arg7[%c0_76, %c0_77] : memref<1x128xf32, #tpu.memory_space<vmem>>, vector<1x128xf32>
    %227 = vector.broadcast %226 : vector<1x128xf32> to vector<2x128xf32>
    %228 = arith.addf %225, %227 : vector<2x128xf32>
    %229 = arith.truncf %222 : vector<2x32xf32> to vector<2x32xbf16>
    %c0_78 = arith.constant 0 : index
    %c0_79 = arith.constant 0 : index
    %230 = vector.load %arg5[%c0_78, %c0_79] : memref<32x128xbf16, #tpu.memory_space<vmem>>, vector<32x128xbf16>
    %cst_80 = arith.constant dense<0.000000e+00> : vector<2x128xf32>
    %231 = tpu.matmul %229, %230, %cst_80 {dimension_numbers = #tpu.dot_dimension_numbers<[1], [0], [0], [1], [0, 0, 1, 1], [], []>} : vector<2x32xbf16>, vector<32x128xbf16>, vector<2x128xf32> -> vector<2x128xf32>
    %232 = arith.addf %228, %231 : vector<2x128xf32>
    %233 = vector.extract_strided_slice %232 {offsets = [0, 0], sizes = [2, 96], strides = [1, 1]} : vector<2x128xf32> to vector<2x96xf32>
    %234 = arith.negf %233 : vector<2x96xf32>
    %235 = math.exp %234 : vector<2x96xf32>
    %cst_81 = arith.constant 1.000000e+00 : f32
    %236 = vector.broadcast %cst_81 : f32 to vector<2x96xf32>
    %237 = arith.addf %236, %235 : vector<2x96xf32>
    %238 = arith.divf %236, %237 : vector<2x96xf32>
    %239 = vector.extract_strided_slice %232 {offsets = [0, 96], sizes = [2, 32], strides = [1, 1]} : vector<2x128xf32> to vector<2x32xf32>
    %240 = math.tanh %239 : vector<2x32xf32>
    %241 = vector.extract_strided_slice %238 {offsets = [0, 0], sizes = [2, 32], strides = [1, 1]} : vector<2x96xf32> to vector<2x32xf32>
    %242 = vector.extract_strided_slice %238 {offsets = [0, 32], sizes = [2, 32], strides = [1, 1]} : vector<2x96xf32> to vector<2x32xf32>
    %243 = vector.extract_strided_slice %238 {offsets = [0, 64], sizes = [2, 32], strides = [1, 1]} : vector<2x96xf32> to vector<2x32xf32>
    %244 = arith.mulf %242, %198 : vector<2x32xf32>
    %245 = arith.mulf %241, %240 : vector<2x32xf32>
    %246 = arith.addf %244, %245 : vector<2x32xf32>
    %247 = math.tanh %246 : vector<2x32xf32>
    %248 = arith.mulf %243, %247 : vector<2x32xf32>
    %249 = arith.truncf %222 : vector<2x32xf32> to vector<2x32xbf16>
    %c0_82 = arith.constant 0 : index
    %c0_83 = arith.constant 0 : index
    %250 = vector.load %arg3[%c0_82, %c0_83] : memref<32x128xbf16, #tpu.memory_space<vmem>>, vector<32x128xbf16>
    %cst_84 = arith.constant dense<0.000000e+00> : vector<2x128xf32>
    %251 = tpu.matmul %249, %250, %cst_84 {dimension_numbers = #tpu.dot_dimension_numbers<[1], [0], [0], [1], [0, 0, 1, 1], [], []>} : vector<2x32xbf16>, vector<32x128xbf16>, vector<2x128xf32> -> vector<2x128xf32>
    %c0_85 = arith.constant 0 : index
    %c0_86 = arith.constant 0 : index
    %252 = vector.load %arg4[%c0_85, %c0_86] : memref<1x128xf32, #tpu.memory_space<vmem>>, vector<1x128xf32>
    %253 = vector.broadcast %252 : vector<1x128xf32> to vector<2x128xf32>
    %254 = arith.addf %251, %253 : vector<2x128xf32>
    %255 = vector.extract_strided_slice %254 {offsets = [0, 0], sizes = [2, 96], strides = [1, 1]} : vector<2x128xf32> to vector<2x96xf32>
    %256 = arith.negf %255 : vector<2x96xf32>
    %257 = math.exp %256 : vector<2x96xf32>
    %cst_87 = arith.constant 1.000000e+00 : f32
    %258 = vector.broadcast %cst_87 : f32 to vector<2x96xf32>
    %259 = arith.addf %258, %257 : vector<2x96xf32>
    %260 = arith.divf %258, %259 : vector<2x96xf32>
    %261 = vector.extract_strided_slice %254 {offsets = [0, 96], sizes = [2, 32], strides = [1, 1]} : vector<2x128xf32> to vector<2x32xf32>
    %262 = math.tanh %261 : vector<2x32xf32>
    %263 = vector.extract_strided_slice %260 {offsets = [0, 0], sizes = [2, 32], strides = [1, 1]} : vector<2x96xf32> to vector<2x32xf32>
    %264 = vector.extract_strided_slice %260 {offsets = [0, 32], sizes = [2, 32], strides = [1, 1]} : vector<2x96xf32> to vector<2x32xf32>
    %265 = vector.extract_strided_slice %260 {offsets = [0, 64], sizes = [2, 32], strides = [1, 1]} : vector<2x96xf32> to vector<2x32xf32>
    %266 = arith.mulf %264, %220 : vector<2x32xf32>
    %267 = arith.mulf %263, %262 : vector<2x32xf32>
    %268 = arith.addf %266, %267 : vector<2x32xf32>
    %269 = math.tanh %268 : vector<2x32xf32>
    %270 = arith.mulf %265, %269 : vector<2x32xf32>
    %271 = arith.truncf %248 : vector<2x32xf32> to vector<2x32xbf16>
    %c0_88 = arith.constant 0 : index
    %c0_89 = arith.constant 0 : index
    %272 = vector.load %arg6[%c0_88, %c0_89] : memref<32x128xbf16, #tpu.memory_space<vmem>>, vector<32x128xbf16>
    %cst_90 = arith.constant dense<0.000000e+00> : vector<2x128xf32>
    %273 = tpu.matmul %271, %272, %cst_90 {dimension_numbers = #tpu.dot_dimension_numbers<[1], [0], [0], [1], [0, 0, 1, 1], [], []>} : vector<2x32xbf16>, vector<32x128xbf16>, vector<2x128xf32> -> vector<2x128xf32>
    %c0_91 = arith.constant 0 : index
    %c0_92 = arith.constant 0 : index
    %274 = vector.load %arg7[%c0_91, %c0_92] : memref<1x128xf32, #tpu.memory_space<vmem>>, vector<1x128xf32>
    %275 = vector.broadcast %274 : vector<1x128xf32> to vector<2x128xf32>
    %276 = arith.addf %273, %275 : vector<2x128xf32>
    %277 = arith.truncf %270 : vector<2x32xf32> to vector<2x32xbf16>
    %c0_93 = arith.constant 0 : index
    %c0_94 = arith.constant 0 : index
    %278 = vector.load %arg5[%c0_93, %c0_94] : memref<32x128xbf16, #tpu.memory_space<vmem>>, vector<32x128xbf16>
    %cst_95 = arith.constant dense<0.000000e+00> : vector<2x128xf32>
    %279 = tpu.matmul %277, %278, %cst_95 {dimension_numbers = #tpu.dot_dimension_numbers<[1], [0], [0], [1], [0, 0, 1, 1], [], []>} : vector<2x32xbf16>, vector<32x128xbf16>, vector<2x128xf32> -> vector<2x128xf32>
    %280 = arith.addf %276, %279 : vector<2x128xf32>
    %281 = vector.extract_strided_slice %280 {offsets = [0, 0], sizes = [2, 96], strides = [1, 1]} : vector<2x128xf32> to vector<2x96xf32>
    %282 = arith.negf %281 : vector<2x96xf32>
    %283 = math.exp %282 : vector<2x96xf32>
    %cst_96 = arith.constant 1.000000e+00 : f32
    %284 = vector.broadcast %cst_96 : f32 to vector<2x96xf32>
    %285 = arith.addf %284, %283 : vector<2x96xf32>
    %286 = arith.divf %284, %285 : vector<2x96xf32>
    %287 = vector.extract_strided_slice %280 {offsets = [0, 96], sizes = [2, 32], strides = [1, 1]} : vector<2x128xf32> to vector<2x32xf32>
    %288 = math.tanh %287 : vector<2x32xf32>
    %289 = vector.extract_strided_slice %286 {offsets = [0, 0], sizes = [2, 32], strides = [1, 1]} : vector<2x96xf32> to vector<2x32xf32>
    %290 = vector.extract_strided_slice %286 {offsets = [0, 32], sizes = [2, 32], strides = [1, 1]} : vector<2x96xf32> to vector<2x32xf32>
    %291 = vector.extract_strided_slice %286 {offsets = [0, 64], sizes = [2, 32], strides = [1, 1]} : vector<2x96xf32> to vector<2x32xf32>
    %292 = arith.mulf %290, %246 : vector<2x32xf32>
    %293 = arith.mulf %289, %288 : vector<2x32xf32>
    %294 = arith.addf %292, %293 : vector<2x32xf32>
    %295 = math.tanh %294 : vector<2x32xf32>
    %296 = arith.mulf %291, %295 : vector<2x32xf32>
    %297 = arith.truncf %270 : vector<2x32xf32> to vector<2x32xbf16>
    %c0_97 = arith.constant 0 : index
    %c0_98 = arith.constant 0 : index
    %298 = vector.load %arg3[%c0_97, %c0_98] : memref<32x128xbf16, #tpu.memory_space<vmem>>, vector<32x128xbf16>
    %cst_99 = arith.constant dense<0.000000e+00> : vector<2x128xf32>
    %299 = tpu.matmul %297, %298, %cst_99 {dimension_numbers = #tpu.dot_dimension_numbers<[1], [0], [0], [1], [0, 0, 1, 1], [], []>} : vector<2x32xbf16>, vector<32x128xbf16>, vector<2x128xf32> -> vector<2x128xf32>
    %c0_100 = arith.constant 0 : index
    %c0_101 = arith.constant 0 : index
    %300 = vector.load %arg4[%c0_100, %c0_101] : memref<1x128xf32, #tpu.memory_space<vmem>>, vector<1x128xf32>
    %301 = vector.broadcast %300 : vector<1x128xf32> to vector<2x128xf32>
    %302 = arith.addf %299, %301 : vector<2x128xf32>
    %303 = vector.extract_strided_slice %302 {offsets = [0, 0], sizes = [2, 96], strides = [1, 1]} : vector<2x128xf32> to vector<2x96xf32>
    %304 = arith.negf %303 : vector<2x96xf32>
    %305 = math.exp %304 : vector<2x96xf32>
    %cst_102 = arith.constant 1.000000e+00 : f32
    %306 = vector.broadcast %cst_102 : f32 to vector<2x96xf32>
    %307 = arith.addf %306, %305 : vector<2x96xf32>
    %308 = arith.divf %306, %307 : vector<2x96xf32>
    %309 = vector.extract_strided_slice %302 {offsets = [0, 96], sizes = [2, 32], strides = [1, 1]} : vector<2x128xf32> to vector<2x32xf32>
    %310 = math.tanh %309 : vector<2x32xf32>
    %311 = vector.extract_strided_slice %308 {offsets = [0, 0], sizes = [2, 32], strides = [1, 1]} : vector<2x96xf32> to vector<2x32xf32>
    %312 = vector.extract_strided_slice %308 {offsets = [0, 32], sizes = [2, 32], strides = [1, 1]} : vector<2x96xf32> to vector<2x32xf32>
    %313 = vector.extract_strided_slice %308 {offsets = [0, 64], sizes = [2, 32], strides = [1, 1]} : vector<2x96xf32> to vector<2x32xf32>
    %314 = arith.mulf %312, %268 : vector<2x32xf32>
    %315 = arith.mulf %311, %310 : vector<2x32xf32>
    %316 = arith.addf %314, %315 : vector<2x32xf32>
    %317 = math.tanh %316 : vector<2x32xf32>
    %318 = arith.mulf %313, %317 : vector<2x32xf32>
    %319 = arith.truncf %296 : vector<2x32xf32> to vector<2x32xbf16>
    %c0_103 = arith.constant 0 : index
    %c0_104 = arith.constant 0 : index
    %320 = vector.load %arg6[%c0_103, %c0_104] : memref<32x128xbf16, #tpu.memory_space<vmem>>, vector<32x128xbf16>
    %cst_105 = arith.constant dense<0.000000e+00> : vector<2x128xf32>
    %321 = tpu.matmul %319, %320, %cst_105 {dimension_numbers = #tpu.dot_dimension_numbers<[1], [0], [0], [1], [0, 0, 1, 1], [], []>} : vector<2x32xbf16>, vector<32x128xbf16>, vector<2x128xf32> -> vector<2x128xf32>
    %c0_106 = arith.constant 0 : index
    %c0_107 = arith.constant 0 : index
    %322 = vector.load %arg7[%c0_106, %c0_107] : memref<1x128xf32, #tpu.memory_space<vmem>>, vector<1x128xf32>
    %323 = vector.broadcast %322 : vector<1x128xf32> to vector<2x128xf32>
    %324 = arith.addf %321, %323 : vector<2x128xf32>
    %325 = arith.truncf %318 : vector<2x32xf32> to vector<2x32xbf16>
    %c0_108 = arith.constant 0 : index
    %c0_109 = arith.constant 0 : index
    %326 = vector.load %arg5[%c0_108, %c0_109] : memref<32x128xbf16, #tpu.memory_space<vmem>>, vector<32x128xbf16>
    %cst_110 = arith.constant dense<0.000000e+00> : vector<2x128xf32>
    %327 = tpu.matmul %325, %326, %cst_110 {dimension_numbers = #tpu.dot_dimension_numbers<[1], [0], [0], [1], [0, 0, 1, 1], [], []>} : vector<2x32xbf16>, vector<32x128xbf16>, vector<2x128xf32> -> vector<2x128xf32>
    %328 = arith.addf %324, %327 : vector<2x128xf32>
    %329 = vector.extract_strided_slice %328 {offsets = [0, 0], sizes = [2, 96], strides = [1, 1]} : vector<2x128xf32> to vector<2x96xf32>
    %330 = arith.negf %329 : vector<2x96xf32>
    %331 = math.exp %330 : vector<2x96xf32>
    %cst_111 = arith.constant 1.000000e+00 : f32
    %332 = vector.broadcast %cst_111 : f32 to vector<2x96xf32>
    %333 = arith.addf %332, %331 : vector<2x96xf32>
    %334 = arith.divf %332, %333 : vector<2x96xf32>
    %335 = vector.extract_strided_slice %328 {offsets = [0, 96], sizes = [2, 32], strides = [1, 1]} : vector<2x128xf32> to vector<2x32xf32>
    %336 = math.tanh %335 : vector<2x32xf32>
    %337 = vector.extract_strided_slice %334 {offsets = [0, 0], sizes = [2, 32], strides = [1, 1]} : vector<2x96xf32> to vector<2x32xf32>
    %338 = vector.extract_strided_slice %334 {offsets = [0, 32], sizes = [2, 32], strides = [1, 1]} : vector<2x96xf32> to vector<2x32xf32>
    %339 = vector.extract_strided_slice %334 {offsets = [0, 64], sizes = [2, 32], strides = [1, 1]} : vector<2x96xf32> to vector<2x32xf32>
    %340 = arith.mulf %338, %294 : vector<2x32xf32>
    %341 = arith.mulf %337, %336 : vector<2x32xf32>
    %342 = arith.addf %340, %341 : vector<2x32xf32>
    %343 = math.tanh %342 : vector<2x32xf32>
    %344 = arith.mulf %339, %343 : vector<2x32xf32>
    %345 = arith.truncf %318 : vector<2x32xf32> to vector<2x32xbf16>
    %c0_112 = arith.constant 0 : index
    %c0_113 = arith.constant 0 : index
    %346 = vector.load %arg3[%c0_112, %c0_113] : memref<32x128xbf16, #tpu.memory_space<vmem>>, vector<32x128xbf16>
    %cst_114 = arith.constant dense<0.000000e+00> : vector<2x128xf32>
    %347 = tpu.matmul %345, %346, %cst_114 {dimension_numbers = #tpu.dot_dimension_numbers<[1], [0], [0], [1], [0, 0, 1, 1], [], []>} : vector<2x32xbf16>, vector<32x128xbf16>, vector<2x128xf32> -> vector<2x128xf32>
    %c0_115 = arith.constant 0 : index
    %c0_116 = arith.constant 0 : index
    %348 = vector.load %arg4[%c0_115, %c0_116] : memref<1x128xf32, #tpu.memory_space<vmem>>, vector<1x128xf32>
    %349 = vector.broadcast %348 : vector<1x128xf32> to vector<2x128xf32>
    %350 = arith.addf %347, %349 : vector<2x128xf32>
    %351 = vector.extract_strided_slice %350 {offsets = [0, 0], sizes = [2, 96], strides = [1, 1]} : vector<2x128xf32> to vector<2x96xf32>
    %352 = arith.negf %351 : vector<2x96xf32>
    %353 = math.exp %352 : vector<2x96xf32>
    %cst_117 = arith.constant 1.000000e+00 : f32
    %354 = vector.broadcast %cst_117 : f32 to vector<2x96xf32>
    %355 = arith.addf %354, %353 : vector<2x96xf32>
    %356 = arith.divf %354, %355 : vector<2x96xf32>
    %357 = vector.extract_strided_slice %350 {offsets = [0, 96], sizes = [2, 32], strides = [1, 1]} : vector<2x128xf32> to vector<2x32xf32>
    %358 = math.tanh %357 : vector<2x32xf32>
    %359 = vector.extract_strided_slice %356 {offsets = [0, 0], sizes = [2, 32], strides = [1, 1]} : vector<2x96xf32> to vector<2x32xf32>
    %360 = vector.extract_strided_slice %356 {offsets = [0, 32], sizes = [2, 32], strides = [1, 1]} : vector<2x96xf32> to vector<2x32xf32>
    %361 = vector.extract_strided_slice %356 {offsets = [0, 64], sizes = [2, 32], strides = [1, 1]} : vector<2x96xf32> to vector<2x32xf32>
    %362 = arith.mulf %360, %316 : vector<2x32xf32>
    %363 = arith.mulf %359, %358 : vector<2x32xf32>
    %364 = arith.addf %362, %363 : vector<2x32xf32>
    %365 = math.tanh %364 : vector<2x32xf32>
    %366 = arith.mulf %361, %365 : vector<2x32xf32>
    %367 = arith.truncf %344 : vector<2x32xf32> to vector<2x32xbf16>
    %c0_118 = arith.constant 0 : index
    %c0_119 = arith.constant 0 : index
    %368 = vector.load %arg6[%c0_118, %c0_119] : memref<32x128xbf16, #tpu.memory_space<vmem>>, vector<32x128xbf16>
    %cst_120 = arith.constant dense<0.000000e+00> : vector<2x128xf32>
    %369 = tpu.matmul %367, %368, %cst_120 {dimension_numbers = #tpu.dot_dimension_numbers<[1], [0], [0], [1], [0, 0, 1, 1], [], []>} : vector<2x32xbf16>, vector<32x128xbf16>, vector<2x128xf32> -> vector<2x128xf32>
    %c0_121 = arith.constant 0 : index
    %c0_122 = arith.constant 0 : index
    %370 = vector.load %arg7[%c0_121, %c0_122] : memref<1x128xf32, #tpu.memory_space<vmem>>, vector<1x128xf32>
    %371 = vector.broadcast %370 : vector<1x128xf32> to vector<2x128xf32>
    %372 = arith.addf %369, %371 : vector<2x128xf32>
    %373 = arith.truncf %366 : vector<2x32xf32> to vector<2x32xbf16>
    %c0_123 = arith.constant 0 : index
    %c0_124 = arith.constant 0 : index
    %374 = vector.load %arg5[%c0_123, %c0_124] : memref<32x128xbf16, #tpu.memory_space<vmem>>, vector<32x128xbf16>
    %cst_125 = arith.constant dense<0.000000e+00> : vector<2x128xf32>
    %375 = tpu.matmul %373, %374, %cst_125 {dimension_numbers = #tpu.dot_dimension_numbers<[1], [0], [0], [1], [0, 0, 1, 1], [], []>} : vector<2x32xbf16>, vector<32x128xbf16>, vector<2x128xf32> -> vector<2x128xf32>
    %376 = arith.addf %372, %375 : vector<2x128xf32>
    %377 = vector.extract_strided_slice %376 {offsets = [0, 0], sizes = [2, 96], strides = [1, 1]} : vector<2x128xf32> to vector<2x96xf32>
    %378 = arith.negf %377 : vector<2x96xf32>
    %379 = math.exp %378 : vector<2x96xf32>
    %cst_126 = arith.constant 1.000000e+00 : f32
    %380 = vector.broadcast %cst_126 : f32 to vector<2x96xf32>
    %381 = arith.addf %380, %379 : vector<2x96xf32>
    %382 = arith.divf %380, %381 : vector<2x96xf32>
    %383 = vector.extract_strided_slice %376 {offsets = [0, 96], sizes = [2, 32], strides = [1, 1]} : vector<2x128xf32> to vector<2x32xf32>
    %384 = math.tanh %383 : vector<2x32xf32>
    %385 = vector.extract_strided_slice %382 {offsets = [0, 0], sizes = [2, 32], strides = [1, 1]} : vector<2x96xf32> to vector<2x32xf32>
    %386 = vector.extract_strided_slice %382 {offsets = [0, 32], sizes = [2, 32], strides = [1, 1]} : vector<2x96xf32> to vector<2x32xf32>
    %387 = vector.extract_strided_slice %382 {offsets = [0, 64], sizes = [2, 32], strides = [1, 1]} : vector<2x96xf32> to vector<2x32xf32>
    %388 = arith.mulf %386, %342 : vector<2x32xf32>
    %389 = arith.mulf %385, %384 : vector<2x32xf32>
    %390 = arith.addf %388, %389 : vector<2x32xf32>
    %391 = math.tanh %390 : vector<2x32xf32>
    %392 = arith.mulf %387, %391 : vector<2x32xf32>
    %393 = tpu.concatenate %56, %104, %152, %200, %248, %296, %344, %392 in 1 : vector<2x32xf32>, vector<2x32xf32>, vector<2x32xf32>, vector<2x32xf32>, vector<2x32xf32>, vector<2x32xf32>, vector<2x32xf32>, vector<2x32xf32> -> vector<2x256xf32>
    %394 = arith.truncf %393 : vector<2x256xf32> to vector<2x256xbf16>
    %c0_127 = arith.constant 0 : index
    %c0_128 = arith.constant 0 : index
    %395 = vector.load %arg8[%c0_127, %c0_128] : memref<256x32xbf16, #tpu.memory_space<vmem>>, vector<256x32xbf16>
    %cst_129 = arith.constant dense<0.000000e+00> : vector<2x32xf32>
    %396 = tpu.matmul %394, %395, %cst_129 {dimension_numbers = #tpu.dot_dimension_numbers<[1], [0], [0], [1], [0, 0, 1, 1], [], []>} : vector<2x256xbf16>, vector<256x32xbf16>, vector<2x32xf32> -> vector<2x32xf32>
    %c0_130 = arith.constant 0 : index
    %c0_131 = arith.constant 0 : index
    %397 = vector.load %arg9[%c0_130, %c0_131] : memref<1x32xf32, #tpu.memory_space<vmem>>, vector<1x32xf32>
    %398 = vector.broadcast %397 : vector<1x32xf32> to vector<2x32xf32>
    %399 = arith.addf %396, %398 : vector<2x32xf32>
    %c0_132 = arith.constant 0 : index
    %c0_133 = arith.constant 0 : index
    %400 = vector.load %arg10[%c0_132, %c0_133] : memref<2x32xf32, #tpu.memory_space<vmem>>, vector<2x32xf32>
    tpu.vector_store %arg10[%c0_132, %c0_133], %399 {strides = array<i32>} : memref<2x32xf32, #tpu.memory_space<vmem>>, vector<2x32xf32>,
    return
  }
}

</mosaic_0001>

<bundles_post_ra>
// kernel: tpu_custom_call.1
= control target key start
LH: loop header
LB: loop body
LE: loop exit
PB: predicated region body
PF: predicated region fallthrough
CT: control target
= control target key end

     0   :  { %vm51_vm0 = vcmask 130048   ;;  %s2106_s0 = inlined_call_operand.vmem [shape: f32[2,16], index: 0, kind: input, shape index: {}]   ;;  %s2107_s1 = inlined_call_operand.vmem [shape: bf16[16,32], index: 1, kind: input, shape index: {}]   ;;  %s2108_s2 = inlined_call_operand.vmem [shape: f32[1,32], index: 2, kind: input, shape index: {}]   ;;  %s2109_s3 = inlined_call_operand.vmem [shape: bf16[32,128], index: 3, kind: input, shape index: {}]   ;;  %s2110_s4 = inlined_call_operand.vmem [shape: f32[1,128], index: 4, kind: input, shape index: {}]   ;;  %s2111_s5 = inlined_call_operand.vmem [shape: bf16[32,128], index: 5, kind: input, shape index: {}]   ;;  %s2112_s6 = inlined_call_operand.vmem [shape: bf16[32,128], index: 6, kind: input, shape index: {}]   ;;  %s2113_s7 = inlined_call_operand.vmem [shape: f32[1,128], index: 7, kind: input, shape index: {}]   ;;  %s2114_s8 = inlined_call_operand.vmem [shape: bf16[256,32], index: 8, kind: input, shape index: {}]   ;;  %s2115_s9 = inlined_call_operand.vmem [shape: f32[1,32], index: 9, kind: input, shape index: {}]   ;;  %s2116_s10 = inlined_call_operand.hbm [shape: f32[2,32], index: 10, kind: output, shape index: {}]  }
   0x1   :  { %v1489_v0 = vld [vmem:[%s2107_s1] sm:$0xff]  ;;  %v1749_v2 = vld [vmem:[%s2109_s3 + $0x8] sm:$0xff] }
   0x2   :  { %v37_v1 = vld [vmem:[%s2106_s0] sm:$0x3]  ;;  %v1754_v4 = vld [vmem:[%s2112_s6 + $0x8] sm:$0xff]  ;;  %62 = vmatpush.bf16.msra.mxu0 %v1489_v0  ;;  %99 = vmatpush.bf16.msra.mxu3 %v1749_v2 }
   0x3   :  { %v38_v3 = vpack.c.bf16 %v37_v1, %v37_v1  ;;  %313 = vmatpush.bf16.msra.mxu1 %v1754_v4 }
   0x6   :  { %169 = vmatpush.bf16.msrb.mxu0 %v1754_v4 }
   0x7   :  { %15 = vsyncpa [#allocation3], 0  ;;  %1360 = vmatmul.msk.bf16.vlgmr.msra.gmra.mxu0 %vm51_vm0, %v38_v3  ;;  %v1762_v5 = vld [vmem:[%s2109_s3] sm:$0xff]  ;;  %vm89_vm1 = vcmask 261120   ;;  %v1798_v38 = vld [vmem:[%s2111_s5 + $0x8] sm:$0xff]  ;;  %s1684_s20 = smov [#allocation2]  }
   0x8   :  { %v1767_v6 = vld [vmem:[%s2112_s6] sm:$0xff]  ;;  %100 = vmatpush.bf16.msra.mxu3 %v1762_v5  ;;  %333 = vmatpush.bf16.msra.mxu2 %v1798_v38  ;;  %s1345_s0 = sshll.u32 %s1684_s20, 4  ;;  %s1347_s22 = sshll.u32 %s2116_s10, 4  ;;  %s1346_s0 = int_to_ptr.vmem [resolvable:$true] %s1345_s0  ;;  %s1348_s22 = int_to_ptr.hbm [resolvable:$true] %s1347_s22 }
   0x9   :  { %314 = vmatpush.bf16.msra.mxu1 %v1767_v6  ;;  %v1521_v7 = vld [vmem:[%s2108_s2] ss:$0 sm:$0xff]  ;;  %s1681_s2 = smov 32  }
   0xa   :  { %170 = vmatpush.bf16.msrb.mxu0 %v1767_v6  ;;  %v1786_v13 = vld [vmem:[%s2110_s4] ss:$0 sm:$0xff] }
   0xb   :  { %v1804_v39 = vld [vmem:[%s2111_s5] sm:$0xff]  ;;  %s1682_s5 = smov 64  }
   0xc   :  { %205 = vmatpush.bf16.msrb.mxu3 %v1798_v38  ;;  %334 = vmatpush.bf16.msra.mxu2 %v1804_v39  ;;  %v1825_v45 = vld [vmem:[%s2113_s7] ss:$0 sm:$0xff] }
   0xd   :  { %461 = vmatpush.bf16.msrb.mxu1 %v1798_v38 }
   0xe   :  { %256 = vmatpush.bf16.msra.mxu0 %v1749_v2 }
  0x10   :  { %206 = vmatpush.bf16.msrb.mxu3 %v1804_v39  ;;  %512 = vmatpush.bf16.msrb.mxu2 %v1749_v2 }
  0x11   :  { %462 = vmatpush.bf16.msrb.mxu1 %v1804_v39 }
  0x12   :  { %257 = vmatpush.bf16.msra.mxu0 %v1762_v5 }
  0x14   :  { %513 = vmatpush.bf16.msrb.mxu2 %v1762_v5 }
  0x84   :  { %v64_v8 = vpop.f32.mrf.mxu0 }
  0x85   :  { %v65_v9 = vadd.f32 %v1521_v7, %v64_v8 }
  0x87   :  { %v68_v10 = vpack.c.bf16 %v65_v9, %v65_v9 }
  0x89   :  { %1369 = vmatmul.msk.bf16.vlgmr.msra.gmra.mxu3 %vm89_vm1, %v68_v10  ;;  %1379 = vmatmul.msk.bf16.vlgmr.msrb.gmra.mxu0 %vm89_vm1, %v68_v10 }
  0x8a   :  { %441 = vmatpush.bf16.msrb.mxu0 %v1754_v4  ;;  %384 = vmatpush.bf16.msra.mxu3 %v1749_v2 }
  0x8c   :  { %v66_v11 = vpop.f32.mrf.mxu0 }
  0x8e   :  { %442 = vmatpush.bf16.msrb.mxu0 %v1767_v6  ;;  %385 = vmatpush.bf16.msra.mxu3 %v1762_v5 }
 0x106   :  { %v1781_v12 = vpop.f32.mrf.mxu0 }
 0x107   :  { %v173_v47 = vadd.f32 %v1825_v45, %v1781_v12 }
 0x10c   :  { %v102_v14 = vpop.f32.mrf.mxu3 }
 0x10d   :  { %v103_v15 = vadd.f32 %v1786_v13, %v102_v14 }
 0x10e   :  { %v174_v16 = vpop.f32.mrf.mxu0 }
 0x10f   :  { %1525 = vtanh.f32 %v103_v15  ;;  %v1370_v19 = vmul.f32 -1.442695, %v103_v15 }
 0x111   :  { %1527 = vpow2.f32 %v1370_v19 }
 0x114   :  { %v104_v17 = vpop.f32.mrf.mxu3 }
 0x115   :  { %v1526_v18 = vpop.eup %1525 }
 0x116   :  { %128 = vrot.lane.b32.xlu0 %v1526_v18, %s1681_s2 }
 0x117   :  { %v1528_v20 = vpop.eup %1527 }
 0x118   :  { %v109_v21 = vadd.f32 1.0, %v1528_v20 }
 0x11a   :  { %1529 = vrcp.f32 %v109_v21  ;;  %v121_v27 = vand.u32 2147483648, %v109_v21  ;;  %vm115_vm3 = vweird.f32 %v109_v21  ;;  %v119_v28 = vand.u32 2147483647, %v109_v21 }
 0x11c   :  { %v122_v30 = vor.u32 1.1754944e-38, %v121_v27  ;;  %vm120_vm5 = vcmp.eq.f32.partialorder %v119_v28, 8.507059e+37 }
 0x120   :  { %v1530_v22 = vpop.eup %1529 }
 0x121   :  { %v111_v23 = vmul.f32 %v1530_v22, %v109_v21  ;;  %vm116_vm2 = vweird.f32 %v1530_v22 }
 0x122   :  { %vm117_vm4 = vmor %vm115_vm3, %vm116_vm2 }
 0x123   :  { %v112_v24 = vsub.f32 1.0, %v111_v23 }
 0x125   :  { %v113_v25 = vmul.f32 %v1530_v22, %v112_v24 }
 0x127   :  { %v114_v26 = vadd.f32 %v1530_v22, %v113_v25 }
 0x129   :  { %v118_v29 = vsel %vm117_vm4, %v1530_v22, %v114_v26 }
 0x12a   :  { %v123_v32 = vsel %vm120_vm5, %v122_v30, %v118_v29 }
 0x12b   :  { %v126_v34 = vmul.f32 0.0, %v123_v32 }
 0x188   :  { %v129_v31 = vpop.permute.xlu0 %128 }
 0x189   :  { %v131_v33 = vmul.f32 %v129_v31, %v123_v32 }
 0x18b   :  { %133 = vrot.lane.b32.xlu0 %v131_v33, %s1681_s2 }
 0x1fd   :  { %v134_v35 = vpop.permute.xlu0 %133 }
 0x1fe   :  { %v1791_v36 = vadd.f32 %v134_v35, %v126_v34 }
 0x200   :  { %1531 = vtanh.f32 %v1791_v36 }
 0x206   :  { %v1532_v37 = vpop.eup %1531 }
 0x207   :  { %139 = vrot.lane.b32.xlu1 %v1532_v37, %s1681_s2 }
 0x279   :  { %v140_v40 = vpop.permute.xlu1 %139 }
 0x27a   :  { %v142_v41 = vmul.f32 %v140_v40, %v123_v32 }
 0x27c   :  { %v176_v42 = vpack.c.bf16 %v142_v41, %v142_v41 }
 0x27e   :  { %182 = vrot.lane.b32.xlu1 %v176_v42, %s1682_s5 }
 0x2f0   :  { %v183_v43 = vpop.permute.xlu1 %182 }
 0x2f1   :  { %1388 = vmatmul.msk.bf16.vlgmr.msrb.gmra.mxu3 %vm89_vm1, %v183_v43  ;;  %1390 = vmatmul.msk.bf16.vlgmr.msra.gmra.mxu0 %vm89_vm1, %v183_v43 }
 0x2f2   :  { %569 = vmatpush.bf16.msrb.mxu3 %v1754_v4  ;;  %589 = vmatpush.bf16.msra.mxu0 %v1798_v38 }
 0x2f6   :  { %570 = vmatpush.bf16.msrb.mxu3 %v1767_v6  ;;  %590 = vmatpush.bf16.msra.mxu0 %v1804_v39 }
 0x36e   :  { %v259_v44 = vpop.f32.mrf.mxu0 }
 0x36f   :  { %v260_v46 = vadd.f32 %v1786_v13, %v259_v44 }
 0x371   :  { %1533 = vtanh.f32 %v260_v46  ;;  %v1391_v54 = vmul.f32 -1.442695, %v260_v46 }
 0x374   :  { %v208_v48 = vpop.f32.mrf.mxu3 }
 0x375   :  { %v212_v49 = vadd.f32 %v208_v48, %v173_v47 }
 0x376   :  { %v261_v50 = vpop.f32.mrf.mxu0 }
 0x377   :  { %v1534_v51 = vpop.eup %1533  ;;  %1535 = vtanh.f32 %v212_v49  ;;  %v1389_v55 = vmul.f32 -1.442695, %v212_v49 }
 0x378   :  { %285 = vrot.lane.b32.xlu2 %v1534_v51, %s1681_s2  ;;  %1537 = vpow2.f32 %v1391_v54 }
 0x379   :  { %1539 = vpow2.f32 %v1389_v55 }
 0x37c   :  { %v210_v52 = vpop.f32.mrf.mxu3 }
 0x37d   :  { %v1536_v53 = vpop.eup %1535 }
 0x37e   :  { %v1538_v56 = vpop.eup %1537 }
 0x37f   :  { %v266_v57 = vadd.f32 1.0, %v1538_v56  ;;  %v1540_v58 = vpop.eup %1539 }
 0x380   :  { %235 = vrot.lane.b32.xlu2 %v1536_v53, %s1681_s2  ;;  %v216_v59 = vadd.f32 1.0, %v1540_v58 }
 0x381   :  { %1541 = vrcp.f32 %v266_v57  ;;  %v278_v8 = vand.u32 2147483648, %v266_v57  ;;  %vm272_vm7 = vweird.f32 %v266_v57  ;;  %v276_v9 = vand.u32 2147483647, %v266_v57 }
 0x382   :  { %1543 = vrcp.f32 %v216_v59  ;;  %v228_v18 = vand.u32 2147483648, %v216_v59  ;;  %vm222_vm11 = vweird.f32 %v216_v59  ;;  %v226_v19 = vand.u32 2147483647, %v216_v59 }
 0x383   :  { %v279_v12 = vor.u32 1.1754944e-38, %v278_v8  ;;  %vm277_vm9 = vcmp.eq.f32.partialorder %v276_v9, 8.507059e+37 }
 0x384   :  { %v229_v21 = vor.u32 1.1754944e-38, %v228_v18  ;;  %vm227_vm13 = vcmp.eq.f32.partialorder %v226_v19, 8.507059e+37 }
 0x387   :  { %v1542_v60 = vpop.eup %1541 }
 0x388   :  { %v268_v61 = vmul.f32 %v1542_v60, %v266_v57  ;;  %v1544_v63 = vpop.eup %1543  ;;  %vm273_vm6 = vweird.f32 %v1542_v60 }
 0x389   :  { %v218_v1 = vmul.f32 %v1544_v63, %v216_v59  ;;  %vm274_vm8 = vmor %vm272_vm7, %vm273_vm6  ;;  %vm223_vm10 = vweird.f32 %v1544_v63 }
 0x38a   :  { %v269_v62 = vsub.f32 1.0, %v268_v61  ;;  %vm224_vm12 = vmor %vm222_vm11, %vm223_vm10 }
 0x38b   :  { %v219_v7 = vsub.f32 1.0, %v218_v1 }
 0x38c   :  { %v270_v0 = vmul.f32 %v1542_v60, %v269_v62 }
 0x38d   :  { %v220_v11 = vmul.f32 %v1544_v63, %v219_v7 }
 0x38e   :  { %v271_v3 = vadd.f32 %v1542_v60, %v270_v0 }
 0x38f   :  { %v221_v17 = vadd.f32 %v1544_v63, %v220_v11 }
 0x390   :  { %v275_v10 = vsel %vm274_vm8, %v1542_v60, %v271_v3 }
 0x391   :  { %v280_v15 = vsel %vm277_vm9, %v279_v12, %v275_v10  ;;  %v225_v20 = vsel %vm224_vm12, %v1544_v63, %v221_v17 }
 0x392   :  { %v230_v23 = vsel %vm227_vm13, %v229_v21, %v225_v20  ;;  %v283_v25 = vmul.f32 %v280_v15, %v1791_v36 }
 0x393   :  { %v233_v28 = vmul.f32 0.0, %v230_v23 }
 0x3d2   :  { %v286_v14 = vpop.permute.xlu2 %285 }
 0x3d3   :  { %v288_v16 = vmul.f32 %v286_v14, %v280_v15 }
 0x3d5   :  { %290 = vrot.lane.b32.xlu0 %v288_v16, %s1681_s2 }
 0x3da   :  { %v236_v22 = vpop.permute.xlu2 %235 }
 0x3db   :  { %v238_v24 = vmul.f32 %v236_v22, %v230_v23 }
 0x3dd   :  { %240 = vrot.lane.b32.xlu1 %v238_v24, %s1681_s2 }
 0x447   :  { %v291_v26 = vpop.permute.xlu0 %290 }
 0x448   :  { %v1835_v27 = vadd.f32 %v291_v26, %v283_v25 }
 0x44a   :  { %1545 = vtanh.f32 %v1835_v27 }
 0x44f   :  { %v241_v29 = vpop.permute.xlu1 %240 }
 0x450   :  { %v1546_v30 = vpop.eup %1545  ;;  %v1838_v31 = vadd.f32 %v241_v29, %v233_v28 }
 0x451   :  { %296 = vrot.lane.b32.xlu2 %v1546_v30, %s1681_s2 }
 0x452   :  { %1547 = vtanh.f32 %v1838_v31 }
 0x458   :  { %v1548_v32 = vpop.eup %1547 }
 0x459   :  { %246 = vrot.lane.b32.xlu0 %v1548_v32, %s1681_s2 }
 0x4ab   :  { %v297_v33 = vpop.permute.xlu2 %296 }
 0x4ac   :  { %v299_v34 = vmul.f32 %v297_v33, %v280_v15 }
 0x4ae   :  { %v320_v35 = vpack.c.bf16 %v299_v34, %v299_v34 }
 0x4b0   :  { %322 = vrot.lane.b32.xlu1 %v320_v35, %s1682_s5 }
 0x4cb   :  { %v247_v36 = vpop.permute.xlu0 %246 }
 0x4cc   :  { %v1844_v37 = vmul.f32 %v247_v36, %v230_v23 }
 0x4ce   :  { %v300_v40 = vpack.c.bf16 %v1844_v37, %v1844_v37 }
 0x4d0   :  { %302 = vrot.lane.b32.xlu2 %v300_v40, %s1682_s5 }
 0x522   :  { %v323_v41 = vpop.permute.xlu1 %322 }
 0x523   :  { %1393 = vmatmul.msk.bf16.vlgmr.msra.gmra.mxu2 %vm89_vm1, %v323_v41  ;;  %1395 = vmatmul.msk.bf16.vlgmr.msra.gmra.mxu3 %vm89_vm1, %v323_v41 }
 0x524   :  { %717 = vmatpush.bf16.msra.mxu3 %v1798_v38  ;;  %697 = vmatpush.bf16.msra.mxu2 %v1754_v4 }
 0x528   :  { %718 = vmatpush.bf16.msra.mxu3 %v1804_v39  ;;  %698 = vmatpush.bf16.msra.mxu2 %v1767_v6 }
 0x52a   :  { %v303_v42 = vpop.permute.xlu2 %302 }
 0x52b   :  { %1392 = vmatmul.msk.bf16.vlgmr.msra.gmra.mxu1 %vm89_vm1, %v303_v42 }
 0x52c   :  { %640 = vmatpush.bf16.msra.mxu1 %v1749_v2 }
 0x530   :  { %641 = vmatpush.bf16.msra.mxu1 %v1762_v5 }
 0x5a6   :  { %v336_v43 = vpop.f32.mrf.mxu2  ;;  %v387_v44 = vpop.f32.mrf.mxu3 }
 0x5a7   :  { %v388_v46 = vadd.f32 %v1786_v13, %v387_v44 }
 0x5a8   :  { %v316_v47 = vpop.f32.mrf.mxu1 }
 0x5a9   :  { %1549 = vtanh.f32 %v388_v46  ;;  %v317_v48 = vadd.f32 %v1825_v45, %v316_v47  ;;  %v1396_v55 = vmul.f32 -1.442695, %v388_v46 }
 0x5ab   :  { %v340_v49 = vadd.f32 %v336_v43, %v317_v48 }
 0x5ad   :  { %1551 = vtanh.f32 %v340_v49  ;;  %v1394_v56 = vmul.f32 -1.442695, %v340_v49 }
 0x5ae   :  { %v338_v50 = vpop.f32.mrf.mxu2  ;;  %v389_v51 = vpop.f32.mrf.mxu3  ;;  %1553 = vpow2.f32 %v1396_v55 }
 0x5af   :  { %v1550_v52 = vpop.eup %1549  ;;  %1555 = vpow2.f32 %v1394_v56 }
 0x5b0   :  { %v318_v53 = vpop.f32.mrf.mxu1  ;;  %413 = vrot.lane.b32.xlu1 %v1550_v52, %s1681_s2 }
 0x5b3   :  { %v1552_v54 = vpop.eup %1551 }
 0x5b4   :  { %363 = vrot.lane.b32.xlu0 %v1552_v54, %s1681_s2  ;;  %v1554_v57 = vpop.eup %1553 }
 0x5b5   :  { %v394_v58 = vadd.f32 1.0, %v1554_v57  ;;  %v1556_v59 = vpop.eup %1555 }
 0x5b6   :  { %v344_v60 = vadd.f32 1.0, %v1556_v59 }
 0x5b7   :  { %1557 = vrcp.f32 %v394_v58  ;;  %v406_v10 = vand.u32 2147483648, %v394_v58  ;;  %vm400_vm15 = vweird.f32 %v394_v58  ;;  %v404_v11 = vand.u32 2147483647, %v394_v58 }
 0x5b8   :  { %1559 = vrcp.f32 %v344_v60  ;;  %v356_v16 = vand.u32 2147483648, %v344_v60  ;;  %vm350_vm4 = vweird.f32 %v344_v60  ;;  %v354_v17 = vand.u32 2147483647, %v344_v60 }
 0x5b9   :  { %v407_v15 = vor.u32 1.1754944e-38, %v406_v10  ;;  %vm405_vm3 = vcmp.eq.f32.partialorder %v404_v11, 8.507059e+37 }
 0x5ba   :  { %v357_v22 = vor.u32 1.1754944e-38, %v356_v16  ;;  %vm355_vm6 = vcmp.eq.f32.partialorder %v354_v17, 8.507059e+37 }
 0x5bd   :  { %v1558_v61 = vpop.eup %1557 }
 0x5be   :  { %v396_v62 = vmul.f32 %v1558_v61, %v394_v58  ;;  %v1560_v63 = vpop.eup %1559  ;;  %vm401_vm14 = vweird.f32 %v1558_v61 }
 0x5bf   :  { %v346_v1 = vmul.f32 %v1560_v63, %v344_v60  ;;  %vm402_vm0 = vmor %vm400_vm15, %vm401_vm14  ;;  %vm351_vm2 = vweird.f32 %v1560_v63 }
 0x5c0   :  { %v397_v0 = vsub.f32 1.0, %v396_v62  ;;  %vm352_vm5 = vmor %vm350_vm4, %vm351_vm2 }
 0x5c1   :  { %v347_v7 = vsub.f32 1.0, %v346_v1 }
 0x5c2   :  { %v398_v3 = vmul.f32 %v1558_v61, %v397_v0 }
 0x5c3   :  { %v348_v9 = vmul.f32 %v1560_v63, %v347_v7 }
 0x5c4   :  { %v399_v8 = vadd.f32 %v1558_v61, %v398_v3 }
 0x5c5   :  { %v349_v14 = vadd.f32 %v1560_v63, %v348_v9 }
 0x5c6   :  { %v403_v12 = vsel %vm402_vm0, %v1558_v61, %v399_v8 }
 0x5c7   :  { %v408_v19 = vsel %vm405_vm3, %v407_v15, %v403_v12  ;;  %v353_v21 = vsel %vm352_vm5, %v1560_v63, %v349_v14 }
 0x5c8   :  { %v358_v24 = vsel %vm355_vm6, %v357_v22, %v353_v21  ;;  %v411_v32 = vmul.f32 %v408_v19, %v1835_v27 }
 0x5c9   :  { %v361_v26 = vmul.f32 %v358_v24, %v1838_v31 }
 0x622   :  { %v414_v18 = vpop.permute.xlu1 %413 }
 0x623   :  { %v416_v20 = vmul.f32 %v414_v18, %v408_v19 }
 0x625   :  { %418 = vrot.lane.b32.xlu0 %v416_v20, %s1681_s2 }
 0x626   :  { %v364_v23 = vpop.permute.xlu0 %363 }
 0x627   :  { %v366_v25 = vmul.f32 %v364_v23, %v358_v24 }
 0x629   :  { %368 = vrot.lane.b32.xlu2 %v366_v25, %s1681_s2 }
 0x683   :  { %v369_v28 = vpop.permute.xlu2 %368 }
 0x684   :  { %v1865_v29 = vadd.f32 %v369_v28, %v361_v26 }
 0x686   :  { %1561 = vtanh.f32 %v1865_v29 }
 0x68c   :  { %v1562_v30 = vpop.eup %1561 }
 0x68d   :  { %374 = vrot.lane.b32.xlu1 %v1562_v30, %s1681_s2 }
 0x697   :  { %v419_v33 = vpop.permute.xlu0 %418 }
 0x698   :  { %v1870_v34 = vadd.f32 %v419_v33, %v411_v32 }
 0x69a   :  { %1563 = vtanh.f32 %v1870_v34 }
 0x6a0   :  { %v1564_v35 = vpop.eup %1563 }
 0x6a1   :  { %424 = vrot.lane.b32.xlu2 %v1564_v35, %s1681_s2 }
 0x6fb   :  { %v425_v36 = vpop.permute.xlu2 %424 }
 0x6fc   :  { %v427_v31 = vmul.f32 %v425_v36, %v408_v19 }
 0x6fe   :  { %v448_v40 = vpack.c.bf16 %v427_v31, %v427_v31 }
 0x6ff   :  { %v375_v41 = vpop.permute.xlu1 %374 }
 0x700   :  { %v1874_v42 = vmul.f32 %v375_v41, %v358_v24  ;;  %450 = vrot.lane.b32.xlu1 %v448_v40, %s1682_s5 }
 0x702   :  { %v428_v43 = vpack.c.bf16 %v1874_v42, %v1874_v42 }
 0x704   :  { %430 = vrot.lane.b32.xlu0 %v428_v43, %s1682_s5 }
 0x772   :  { %v451_v27 = vpop.permute.xlu1 %450 }
 0x773   :  { %1398 = vmatmul.msk.bf16.vlgmr.msrb.gmra.mxu1 %vm89_vm1, %v451_v27  ;;  %1400 = vmatmul.msk.bf16.vlgmr.msrb.gmra.mxu2 %vm89_vm1, %v451_v27 }
 0x774   :  { %845 = vmatpush.bf16.msrb.mxu2 %v1798_v38  ;;  %825 = vmatpush.bf16.msrb.mxu1 %v1754_v4 }
 0x776   :  { %v431_v44 = vpop.permute.xlu0 %430 }
 0x777   :  { %1397 = vmatmul.msk.bf16.vlgmr.msrb.gmra.mxu0 %vm89_vm1, %v431_v44 }
 0x778   :  { %768 = vmatpush.bf16.msrb.mxu0 %v1749_v2  ;;  %846 = vmatpush.bf16.msrb.mxu2 %v1804_v39 }
 0x779   :  { %826 = vmatpush.bf16.msrb.mxu1 %v1767_v6 }
 0x77c   :  { %769 = vmatpush.bf16.msrb.mxu0 %v1762_v5 }
 0x7f0   :  { %v464_v46 = vpop.f32.mrf.mxu1 }
 0x7f4   :  { %v444_v47 = vpop.f32.mrf.mxu0 }
 0x7f5   :  { %v445_v48 = vadd.f32 %v1825_v45, %v444_v47 }
 0x7f6   :  { %v515_v49 = vpop.f32.mrf.mxu2 }
 0x7f7   :  { %v468_v50 = vadd.f32 %v464_v46, %v445_v48  ;;  %v516_v51 = vadd.f32 %v1786_v13, %v515_v49 }
 0x7f8   :  { %v466_v52 = vpop.f32.mrf.mxu1 }
 0x7f9   :  { %1565 = vtanh.f32 %v468_v50  ;;  %v1399_v57 = vmul.f32 -1.442695, %v468_v50  ;;  %v1401_v61 = vmul.f32 -1.442695, %v516_v51 }
 0x7fa   :  { %1567 = vtanh.f32 %v516_v51 }
 0x7fb   :  { %1569 = vpow2.f32 %v1399_v57 }
 0x7fc   :  { %v446_v53 = vpop.f32.mrf.mxu0 }
 0x7fe   :  { %v517_v54 = vpop.f32.mrf.mxu2 }
 0x7ff   :  { %v1566_v55 = vpop.eup %1565 }
 0x800   :  { %v1568_v56 = vpop.eup %1567  ;;  %491 = vrot.lane.b32.xlu2 %v1566_v55, %s1681_s2 }
 0x801   :  { %541 = vrot.lane.b32.xlu0 %v1568_v56, %s1681_s2  ;;  %v1570_v58 = vpop.eup %1569 }
 0x802   :  { %v472_v59 = vadd.f32 1.0, %v1570_v58 }
 0x804   :  { %1571 = vrcp.f32 %v472_v59  ;;  %v484_v8 = vand.u32 2147483648, %v472_v59  ;;  %vm478_vm8 = vweird.f32 %v472_v59  ;;  %v482_v9 = vand.u32 2147483647, %v472_v59 }
 0x805   :  { %1573 = vpow2.f32 %v1401_v61 }
 0x806   :  { %v485_v11 = vor.u32 1.1754944e-38, %v484_v8  ;;  %vm483_vm10 = vcmp.eq.f32.partialorder %v482_v9, 8.507059e+37 }
 0x80a   :  { %v1572_v60 = vpop.eup %1571 }
 0x80b   :  { %v474_v62 = vmul.f32 %v1572_v60, %v472_v59  ;;  %v1574_v1 = vpop.eup %1573  ;;  %vm479_vm7 = vweird.f32 %v1572_v60 }
 0x80c   :  { %v522_v3 = vadd.f32 1.0, %v1574_v1  ;;  %vm480_vm9 = vmor %vm478_vm8, %vm479_vm7 }
 0x80d   :  { %v475_v63 = vsub.f32 1.0, %v474_v62 }
 0x80e   :  { %1575 = vrcp.f32 %v522_v3  ;;  %v534_v21 = vand.u32 2147483648, %v522_v3  ;;  %vm528_vm12 = vweird.f32 %v522_v3  ;;  %v532_v22 = vand.u32 2147483647, %v522_v3 }
 0x80f   :  { %v476_v0 = vmul.f32 %v1572_v60, %v475_v63 }
 0x810   :  { %v535_v24 = vor.u32 1.1754944e-38, %v534_v21  ;;  %vm533_vm14 = vcmp.eq.f32.partialorder %v532_v22, 8.507059e+37 }
 0x811   :  { %v477_v7 = vadd.f32 %v1572_v60, %v476_v0 }
 0x813   :  { %v481_v10 = vsel %vm480_vm9, %v1572_v60, %v477_v7 }
 0x814   :  { %v486_v14 = vsel %vm483_vm10, %v485_v11, %v481_v10  ;;  %v1576_v16 = vpop.eup %1575 }
 0x815   :  { %v524_v17 = vmul.f32 %v1576_v16, %v522_v3  ;;  %vm529_vm11 = vweird.f32 %v1576_v16  ;;  %v489_v30 = vmul.f32 %v486_v14, %v1865_v29 }
 0x816   :  { %vm530_vm13 = vmor %vm528_vm12, %vm529_vm11 }
 0x817   :  { %v525_v18 = vsub.f32 1.0, %v524_v17 }
 0x819   :  { %v526_v19 = vmul.f32 %v1576_v16, %v525_v18 }
 0x81b   :  { %v527_v20 = vadd.f32 %v1576_v16, %v526_v19 }
 0x81d   :  { %v531_v23 = vsel %vm530_vm13, %v1576_v16, %v527_v20 }
 0x81e   :  { %v536_v26 = vsel %vm533_vm14, %v535_v24, %v531_v23 }
 0x81f   :  { %v539_v32 = vmul.f32 %v536_v26, %v1870_v34 }
 0x85a   :  { %v492_v12 = vpop.permute.xlu2 %491 }
 0x85b   :  { %v494_v15 = vmul.f32 %v492_v12, %v486_v14 }
 0x85d   :  { %496 = vrot.lane.b32.xlu1 %v494_v15, %s1681_s2 }
 0x873   :  { %v542_v25 = vpop.permute.xlu0 %541 }
 0x874   :  { %v544_v28 = vmul.f32 %v542_v25, %v536_v26 }
 0x876   :  { %546 = vrot.lane.b32.xlu2 %v544_v28, %s1681_s2 }
 0x8cf   :  { %v497_v33 = vpop.permute.xlu1 %496 }
 0x8d0   :  { %v547_v35 = vpop.permute.xlu2 %546  ;;  %v1897_v36 = vadd.f32 %v497_v33, %v489_v30 }
 0x8d1   :  { %v1899_v31 = vadd.f32 %v547_v35, %v539_v32 }
 0x8d2   :  { %1577 = vtanh.f32 %v1897_v36 }
 0x8d3   :  { %1579 = vtanh.f32 %v1899_v31 }
 0x8d8   :  { %v1578_v40 = vpop.eup %1577 }
 0x8d9   :  { %v1580_v41 = vpop.eup %1579  ;;  %502 = vrot.lane.b32.xlu0 %v1578_v40, %s1681_s2 }
 0x8da   :  { %552 = vrot.lane.b32.xlu1 %v1580_v41, %s1681_s2 }
 0x94b   :  { %v503_v43 = vpop.permute.xlu0 %502 }
 0x94c   :  { %v553_v29 = vpop.permute.xlu1 %552  ;;  %v1905_v27 = vmul.f32 %v503_v43, %v486_v14 }
 0x94d   :  { %v555_v34 = vmul.f32 %v553_v29, %v536_v26 }
 0x94e   :  { %v556_v44 = vpack.c.bf16 %v1905_v27, %v1905_v27 }
 0x94f   :  { %v576_v46 = vpack.c.bf16 %v555_v34, %v555_v34 }
 0x950   :  { %558 = vrot.lane.b32.xlu2 %v556_v44, %s1682_s5 }
 0x951   :  { %578 = vrot.lane.b32.xlu0 %v576_v46, %s1682_s5 }
 0x9aa   :  { %v559_v47 = vpop.permute.xlu2 %558 }
 0x9ab   :  { %1402 = vmatmul.msk.bf16.vlgmr.msrb.gmra.mxu3 %vm89_vm1, %v559_v47 }
 0x9ac   :  { %896 = vmatpush.bf16.msrb.mxu3 %v1749_v2 }
 0x9b0   :  { %897 = vmatpush.bf16.msrb.mxu3 %v1762_v5 }
 0x9c3   :  { %v579_v48 = vpop.permute.xlu0 %578 }
 0x9c4   :  { %1403 = vmatmul.msk.bf16.vlgmr.msra.gmra.mxu0 %vm89_vm1, %v579_v48  ;;  %1405 = vmatmul.msk.bf16.vlgmr.msra.gmra.mxu1 %vm89_vm1, %v579_v48 }
 0x9c5   :  { %953 = vmatpush.bf16.msra.mxu0 %v1754_v4  ;;  %973 = vmatpush.bf16.msra.mxu1 %v1798_v38 }
 0x9c9   :  { %954 = vmatpush.bf16.msra.mxu0 %v1767_v6  ;;  %974 = vmatpush.bf16.msra.mxu1 %v1804_v39 }
 0xa2e   :  { %v572_v49 = vpop.f32.mrf.mxu3 }
 0xa2f   :  { %v573_v51 = vadd.f32 %v1825_v45, %v572_v49 }
 0xa36   :  { %v574_v50 = vpop.f32.mrf.mxu3 }
 0xa41   :  { %v592_v52 = vpop.f32.mrf.mxu0  ;;  %v643_v53 = vpop.f32.mrf.mxu1 }
 0xa42   :  { %v596_v54 = vadd.f32 %v592_v52, %v573_v51  ;;  %v644_v55 = vadd.f32 %v1786_v13, %v643_v53 }
 0xa44   :  { %1581 = vtanh.f32 %v596_v54  ;;  %v1406_v60 = vmul.f32 -1.442695, %v644_v55  ;;  %v1404_v0 = vmul.f32 -1.442695, %v596_v54 }
 0xa45   :  { %1583 = vtanh.f32 %v644_v55 }
 0xa46   :  { %1585 = vpow2.f32 %v1406_v60 }
 0xa49   :  { %v594_v56 = vpop.f32.mrf.mxu0  ;;  %v645_v57 = vpop.f32.mrf.mxu1 }
 0xa4a   :  { %v1582_v58 = vpop.eup %1581 }
 0xa4b   :  { %v1584_v59 = vpop.eup %1583  ;;  %619 = vrot.lane.b32.xlu1 %v1582_v58, %s1681_s2 }
 0xa4c   :  { %669 = vrot.lane.b32.xlu2 %v1584_v59, %s1681_s2  ;;  %v1586_v61 = vpop.eup %1585 }
 0xa4d   :  { %v650_v62 = vadd.f32 1.0, %v1586_v61 }
 0xa4f   :  { %1587 = vrcp.f32 %v650_v62  ;;  %v662_v11 = vand.u32 2147483648, %v650_v62  ;;  %vm656_vm0 = vweird.f32 %v650_v62  ;;  %v660_v12 = vand.u32 2147483647, %v650_v62 }
 0xa50   :  { %1589 = vpow2.f32 %v1404_v0 }
 0xa51   :  { %v663_v15 = vor.u32 1.1754944e-38, %v662_v11  ;;  %vm661_vm3 = vcmp.eq.f32.partialorder %v660_v12, 8.507059e+37 }
 0xa55   :  { %v1588_v63 = vpop.eup %1587 }
 0xa56   :  { %v652_v1 = vmul.f32 %v1588_v63, %v650_v62  ;;  %v1590_v7 = vpop.eup %1589  ;;  %vm657_vm15 = vweird.f32 %v1588_v63 }
 0xa57   :  { %v600_v9 = vadd.f32 1.0, %v1590_v7  ;;  %vm658_vm2 = vmor %vm656_vm0, %vm657_vm15 }
 0xa58   :  { %v653_v3 = vsub.f32 1.0, %v652_v1 }
 0xa59   :  { %1591 = vrcp.f32 %v600_v9  ;;  %v612_v24 = vand.u32 2147483648, %v600_v9  ;;  %vm606_vm5 = vweird.f32 %v600_v9  ;;  %v610_v25 = vand.u32 2147483647, %v600_v9 }
 0xa5a   :  { %v654_v8 = vmul.f32 %v1588_v63, %v653_v3 }
 0xa5b   :  { %v613_v28 = vor.u32 1.1754944e-38, %v612_v24  ;;  %vm611_vm7 = vcmp.eq.f32.partialorder %v610_v25, 8.507059e+37 }
 0xa5c   :  { %v655_v10 = vadd.f32 %v1588_v63, %v654_v8 }
 0xa5e   :  { %v659_v14 = vsel %vm658_vm2, %v1588_v63, %v655_v10 }
 0xa5f   :  { %v664_v17 = vsel %vm661_vm3, %v663_v15, %v659_v14  ;;  %v1592_v18 = vpop.eup %1591 }
 0xa60   :  { %v602_v20 = vmul.f32 %v1592_v18, %v600_v9  ;;  %vm607_vm4 = vweird.f32 %v1592_v18  ;;  %v667_v35 = vmul.f32 %v664_v17, %v1899_v31 }
 0xa61   :  { %vm608_vm6 = vmor %vm606_vm5, %vm607_vm4 }
 0xa62   :  { %v603_v21 = vsub.f32 1.0, %v602_v20 }
 0xa64   :  { %v604_v22 = vmul.f32 %v1592_v18, %v603_v21 }
 0xa66   :  { %v605_v23 = vadd.f32 %v1592_v18, %v604_v22 }
 0xa68   :  { %v609_v26 = vsel %vm608_vm6, %v1592_v18, %v605_v23 }
 0xa69   :  { %v614_v32 = vsel %vm611_vm7, %v613_v28, %v609_v26 }
 0xa6a   :  { %v617_v29 = vmul.f32 %v614_v32, %v1897_v36 }
 0xaa6   :  { %v670_v16 = vpop.permute.xlu2 %669 }
 0xaa7   :  { %v672_v19 = vmul.f32 %v670_v16, %v664_v17 }
 0xaa9   :  { %674 = vrot.lane.b32.xlu1 %v672_v19, %s1681_s2 }
 0xabd   :  { %v620_v30 = vpop.permute.xlu1 %619 }
 0xabe   :  { %v622_v33 = vmul.f32 %v620_v30, %v614_v32 }
 0xac0   :  { %624 = vrot.lane.b32.xlu0 %v622_v33, %s1681_s2 }
 0xb1b   :  { %v675_v40 = vpop.permute.xlu1 %674 }
 0xb1c   :  { %v1927_v41 = vadd.f32 %v675_v40, %v667_v35 }
 0xb1e   :  { %1593 = vtanh.f32 %v1927_v41 }
 0xb24   :  { %v1594_v43 = vpop.eup %1593 }
 0xb25   :  { %680 = vrot.lane.b32.xlu0 %v1594_v43, %s1681_s2 }
 0xb32   :  { %v625_v34 = vpop.permute.xlu0 %624 }
 0xb33   :  { %v1932_v44 = vadd.f32 %v625_v34, %v617_v29 }
 0xb35   :  { %1595 = vtanh.f32 %v1932_v44 }
 0xb3b   :  { %v1596_v46 = vpop.eup %1595 }
 0xb3c   :  { %630 = vrot.lane.b32.xlu2 %v1596_v46, %s1681_s2 }
 0xb96   :  { %v631_v47 = vpop.permute.xlu2 %630 }
 0xb97   :  { %v1936_v31 = vmul.f32 %v631_v47, %v614_v32  ;;  %v681_v48 = vpop.permute.xlu0 %680 }
 0xb98   :  { %v683_v49 = vmul.f32 %v681_v48, %v664_v17 }
 0xb99   :  { %v684_v50 = vpack.c.bf16 %v1936_v31, %v1936_v31 }
 0xb9a   :  { %v704_v51 = vpack.c.bf16 %v683_v49, %v683_v49 }
 0xb9b   :  { %686 = vrot.lane.b32.xlu1 %v684_v50, %s1682_s5 }
 0xb9c   :  { %706 = vrot.lane.b32.xlu2 %v704_v51, %s1682_s5 }
 0xbf6   :  { %v707_v36 = vpop.permute.xlu2 %706 }
 0xbf7   :  { %1408 = vmatmul.msk.bf16.vlgmr.msra.gmra.mxu3 %vm89_vm1, %v707_v36  ;;  %1410 = vmatmul.msk.bf16.vlgmr.msrb.gmra.mxu0 %vm89_vm1, %v707_v36 }
 0xbf8   :  { %1101 = vmatpush.bf16.msrb.mxu0 %v1798_v38  ;;  %1081 = vmatpush.bf16.msra.mxu3 %v1754_v4 }
 0xbfc   :  { %1102 = vmatpush.bf16.msrb.mxu0 %v1804_v39  ;;  %1082 = vmatpush.bf16.msra.mxu3 %v1767_v6 }
 0xc0d   :  { %v687_v52 = vpop.permute.xlu1 %686 }
 0xc0e   :  { %1407 = vmatmul.msk.bf16.vlgmr.msra.gmra.mxu2 %vm89_vm1, %v687_v52 }
 0xc0f   :  { %1024 = vmatpush.bf16.msra.mxu2 %v1749_v2 }
 0xc13   :  { %1025 = vmatpush.bf16.msra.mxu2 %v1762_v5 }
 0xc74   :  { %v771_v53 = vpop.f32.mrf.mxu0 }
 0xc75   :  { %v772_v54 = vadd.f32 %v1786_v13, %v771_v53 }
 0xc77   :  { %1597 = vtanh.f32 %v772_v54  ;;  %v1411_v2 = vmul.f32 -1.442695, %v772_v54 }
 0xc7a   :  { %v720_v55 = vpop.f32.mrf.mxu3 }
 0xc7c   :  { %v773_v56 = vpop.f32.mrf.mxu0 }
 0xc7d   :  { %v1598_v38 = vpop.eup %1597 }
 0xc7e   :  { %797 = vrot.lane.b32.xlu0 %v1598_v38, %s1681_s2 }
 0xc82   :  { %v722_v4 = vpop.f32.mrf.mxu3 }
 0xc91   :  { %v700_v39 = vpop.f32.mrf.mxu2 }
 0xc92   :  { %v701_v6 = vadd.f32 %v1825_v45, %v700_v39 }
 0xc94   :  { %v724_v57 = vadd.f32 %v720_v55, %v701_v6 }
 0xc96   :  { %1599 = vtanh.f32 %v724_v57  ;;  %v1409_v0 = vmul.f32 -1.442695, %v724_v57 }
 0xc97   :  { %1601 = vpow2.f32 %v1411_v2 }
 0xc99   :  { %v702_v58 = vpop.f32.mrf.mxu2 }
 0xc9c   :  { %v1600_v59 = vpop.eup %1599 }
 0xc9d   :  { %747 = vrot.lane.b32.xlu1 %v1600_v59, %s1681_s2  ;;  %v1602_v5 = vpop.eup %1601 }
 0xc9e   :  { %v778_v60 = vadd.f32 1.0, %v1602_v5 }
 0xca0   :  { %1603 = vrcp.f32 %v778_v60  ;;  %v790_v7 = vand.u32 2147483648, %v778_v60  ;;  %vm784_vm9 = vweird.f32 %v778_v60  ;;  %v788_v8 = vand.u32 2147483647, %v778_v60 }
 0xca1   :  { %1605 = vpow2.f32 %v1409_v0 }
 0xca2   :  { %v791_v11 = vor.u32 1.1754944e-38, %v790_v7  ;;  %vm789_vm11 = vcmp.eq.f32.partialorder %v788_v8, 8.507059e+37 }
 0xca6   :  { %v1604_v61 = vpop.eup %1603 }
 0xca7   :  { %v780_v62 = vmul.f32 %v1604_v61, %v778_v60  ;;  %vm785_vm8 = vweird.f32 %v1604_v61  ;;  %v1606_v9 = vpop.eup %1605 }
 0xca8   :  { %vm786_vm10 = vmor %vm784_vm9, %vm785_vm8  ;;  %v728_v12 = vadd.f32 1.0, %v1606_v9 }
 0xca9   :  { %v781_v63 = vsub.f32 1.0, %v780_v62 }
 0xcaa   :  { %1607 = vrcp.f32 %v728_v12  ;;  %v740_v22 = vand.u32 2147483648, %v728_v12  ;;  %vm734_vm13 = vweird.f32 %v728_v12  ;;  %v738_v23 = vand.u32 2147483647, %v728_v12 }
 0xcab   :  { %v782_v1 = vmul.f32 %v1604_v61, %v781_v63 }
 0xcac   :  { %v741_v25 = vor.u32 1.1754944e-38, %v740_v22  ;;  %vm739_vm15 = vcmp.eq.f32.partialorder %v738_v23, 8.507059e+37 }
 0xcad   :  { %v783_v3 = vadd.f32 %v1604_v61, %v782_v1 }
 0xcaf   :  { %v787_v10 = vsel %vm786_vm10, %v1604_v61, %v783_v3 }
 0xcb0   :  { %v792_v15 = vsel %vm789_vm11, %v791_v11, %v787_v10  ;;  %v1608_v17 = vpop.eup %1607 }
 0xcb1   :  { %v730_v18 = vmul.f32 %v1608_v17, %v728_v12  ;;  %vm735_vm12 = vweird.f32 %v1608_v17  ;;  %v795_v32 = vmul.f32 %v792_v15, %v1927_v41 }
 0xcb2   :  { %vm736_vm14 = vmor %vm734_vm13, %vm735_vm12 }
 0xcb3   :  { %v731_v19 = vsub.f32 1.0, %v730_v18 }
 0xcb5   :  { %v732_v20 = vmul.f32 %v1608_v17, %v731_v19 }
 0xcb7   :  { %v733_v21 = vadd.f32 %v1608_v17, %v732_v20 }
 0xcb9   :  { %v737_v24 = vsel %vm736_vm14, %v1608_v17, %v733_v21 }
 0xcba   :  { %v742_v28 = vsel %vm739_vm15, %v741_v25, %v737_v24 }
 0xcbb   :  { %v745_v43 = vmul.f32 %v742_v28, %v1932_v44 }
 0xcf0   :  { %v798_v14 = vpop.permute.xlu0 %797 }
 0xcf1   :  { %v800_v16 = vmul.f32 %v798_v14, %v792_v15 }
 0xcf3   :  { %802 = vrot.lane.b32.xlu2 %v800_v16, %s1681_s2 }
 0xd0f   :  { %v748_v26 = vpop.permute.xlu1 %747 }
 0xd10   :  { %v750_v30 = vmul.f32 %v748_v26, %v742_v28 }
 0xd12   :  { %752 = vrot.lane.b32.xlu0 %v750_v30, %s1681_s2 }
 0xd4d   :  { %v803_v33 = vpop.permute.xlu2 %802 }
 0xd4e   :  { %v1958_v35 = vadd.f32 %v803_v33, %v795_v32 }
 0xd50   :  { %1609 = vtanh.f32 %v1958_v35 }
 0xd56   :  { %v1610_v40 = vpop.eup %1609 }
 0xd57   :  { %808 = vrot.lane.b32.xlu1 %v1610_v40, %s1681_s2 }
 0xd84   :  { %v753_v29 = vpop.permute.xlu0 %752 }
 0xd85   :  { %v1963_v34 = vadd.f32 %v753_v29, %v745_v43 }
 0xd87   :  { %1611 = vtanh.f32 %v1963_v34 }
 0xd8d   :  { %v1612_v46 = vpop.eup %1611 }
 0xd8e   :  { %758 = vrot.lane.b32.xlu2 %v1612_v46, %s1681_s2 }
 0xdc9   :  { %v809_v47 = vpop.permute.xlu1 %808 }
 0xdca   :  { %v811_v41 = vmul.f32 %v809_v47, %v792_v15 }
 0xdcc   :  { %v832_v48 = vpack.c.bf16 %v811_v41, %v811_v41 }
 0xdce   :  { %834 = vrot.lane.b32.xlu0 %v832_v48, %s1682_s5 }
 0xde8   :  { %v759_v49 = vpop.permute.xlu2 %758 }
 0xde9   :  { %v1968_v50 = vmul.f32 %v759_v49, %v742_v28 }
 0xdeb   :  { %v812_v51 = vpack.c.bf16 %v1968_v50, %v1968_v50 }
 0xded   :  { %814 = vrot.lane.b32.xlu1 %v812_v51, %s1682_s5 }
 0xe40   :  { %v835_v44 = vpop.permute.xlu0 %834 }
 0xe41   :  { %1413 = vmatmul.msk.bf16.vlgmr.msrb.gmra.mxu2 %vm89_vm1, %v835_v44  ;;  %1415 = vmatmul.msk.bf16.vlgmr.msrb.gmra.mxu3 %vm89_vm1, %v835_v44 }
 0xe5f   :  { %v815_v36 = vpop.permute.xlu1 %814 }
 0xe60   :  { %1412 = vmatmul.msk.bf16.vlgmr.msrb.gmra.mxu1 %vm89_vm1, %v815_v36 }
 0xec4   :  { %v848_v52 = vpop.f32.mrf.mxu2  ;;  %v899_v53 = vpop.f32.mrf.mxu3 }
 0xec5   :  { %v900_v54 = vadd.f32 %v1786_v13, %v899_v53 }
 0xec7   :  { %1613 = vtanh.f32 %v900_v54  ;;  %v1416_v59 = vmul.f32 -1.442695, %v900_v54 }
 0xecc   :  { %v850_v55 = vpop.f32.mrf.mxu2  ;;  %v901_v56 = vpop.f32.mrf.mxu3 }
 0xecd   :  { %v1614_v38 = vpop.eup %1613  ;;  %v1654_v56 = vld [vmem:[%s2110_s4] ss:$0 sm:$0xff]  ;;  %s1683_s4 = smov 96  }
 0xece   :  { %925 = vrot.lane.b32.xlu0 %v1614_v38, %s1681_s2 }
 0xedd   :  { %v828_v4 = vpop.f32.mrf.mxu1 }
 0xede   :  { %v829_v39 = vadd.f32 %v1825_v45, %v828_v4 }
 0xee0   :  { %v852_v6 = vadd.f32 %v848_v52, %v829_v39  ;;  %v2004_v52 = vld [vmem:[%s2113_s7] ss:$0 sm:$0xff] }
 0xee2   :  { %1615 = vtanh.f32 %v852_v6  ;;  %v1414_v2 = vmul.f32 -1.442695, %v852_v6 }
 0xee3   :  { %1617 = vpow2.f32 %v1416_v59 }
 0xee4   :  { %1619 = vpow2.f32 %v1414_v2 }
 0xee5   :  { %v830_v57 = vpop.f32.mrf.mxu1 }
 0xee8   :  { %v1616_v58 = vpop.eup %1615 }
 0xee9   :  { %875 = vrot.lane.b32.xlu2 %v1616_v58, %s1681_s2  ;;  %v1618_v13 = vpop.eup %1617 }
 0xeea   :  { %v1620_v5 = vpop.eup %1619  ;;  %v906_v60 = vadd.f32 1.0, %v1618_v13 }
 0xeeb   :  { %v856_v61 = vadd.f32 1.0, %v1620_v5 }
 0xeec   :  { %1621 = vrcp.f32 %v906_v60  ;;  %v918_v10 = vand.u32 2147483648, %v906_v60  ;;  %vm912_vm2 = vweird.f32 %v906_v60  ;;  %v916_v11 = vand.u32 2147483647, %v906_v60 }
 0xeed   :  { %1623 = vrcp.f32 %v856_v61  ;;  %v868_v15 = vand.u32 2147483648, %v856_v61  ;;  %vm862_vm5 = vweird.f32 %v856_v61  ;;  %v866_v17 = vand.u32 2147483647, %v856_v61 }
 0xeee   :  { %v919_v16 = vor.u32 1.1754944e-38, %v918_v10  ;;  %vm917_vm6 = vcmp.eq.f32.partialorder %v916_v11, 8.507059e+37 }
 0xeef   :  { %v869_v22 = vor.u32 1.1754944e-38, %v868_v15  ;;  %vm867_vm8 = vcmp.eq.f32.partialorder %v866_v17, 8.507059e+37 }
 0xef2   :  { %v1622_v62 = vpop.eup %1621 }
 0xef3   :  { %v1624_v63 = vpop.eup %1623  ;;  %v908_v0 = vmul.f32 %v1622_v62, %v906_v60  ;;  %vm913_vm0 = vweird.f32 %v1622_v62 }
 0xef4   :  { %v858_v45 = vmul.f32 %v1624_v63, %v856_v61  ;;  %vm914_vm3 = vmor %vm912_vm2, %vm913_vm0  ;;  %vm863_vm4 = vweird.f32 %v1624_v63 }
 0xef5   :  { %v909_v1 = vsub.f32 1.0, %v908_v0  ;;  %vm864_vm7 = vmor %vm862_vm5, %vm863_vm4 }
 0xef6   :  { %v859_v3 = vsub.f32 1.0, %v858_v45 }
 0xef7   :  { %v910_v7 = vmul.f32 %v1622_v62, %v909_v1 }
 0xef8   :  { %v860_v8 = vmul.f32 %v1624_v63, %v859_v3 }
 0xef9   :  { %v911_v9 = vadd.f32 %v1622_v62, %v910_v7 }
 0xefa   :  { %v861_v12 = vadd.f32 %v1624_v63, %v860_v8 }
 0xefb   :  { %v915_v14 = vsel %vm914_vm3, %v1622_v62, %v911_v9 }
 0xefc   :  { %v920_v19 = vsel %vm917_vm6, %v919_v16, %v915_v14  ;;  %v865_v20 = vsel %vm864_vm7, %v1624_v63, %v861_v12  ;;  %vm1171_vm6 = vcmask 523264   ;;  %vm1173_vm7 = vcmask 785408  }
 0xefd   :  { %v870_v24 = vsel %vm867_vm8, %v869_v22, %v865_v20  ;;  %v923_v26 = vmul.f32 %v920_v19, %v1958_v35 }
 0xefe   :  { %v873_v33 = vmul.f32 %v870_v24, %v1963_v34 }
 0xf40   :  { %v926_v18 = vpop.permute.xlu0 %925 }
 0xf41   :  { %v928_v21 = vmul.f32 %v926_v18, %v920_v19 }
 0xf43   :  { %930 = vrot.lane.b32.xlu2 %v928_v21, %s1681_s2  ;;  %v876_v23 = vpop.permute.xlu2 %875 }
 0xf44   :  { %v878_v25 = vmul.f32 %v876_v23, %v870_v24 }
 0xf46   :  { %880 = vrot.lane.b32.xlu1 %v878_v25, %s1681_s2 }
 0xf9d   :  { %v931_v28 = vpop.permute.xlu2 %930 }
 0xf9e   :  { %v1983_v30 = vadd.f32 %v931_v28, %v923_v26 }
 0xfa0   :  { %1625 = vtanh.f32 %v1983_v30 }
 0xfa6   :  { %v1626_v32 = vpop.eup %1625 }
 0xfa7   :  { %936 = vrot.lane.b32.xlu1 %v1626_v32, %s1681_s2 }
 0xfb8   :  { %v881_v40 = vpop.permute.xlu1 %880 }
 0xfb9   :  { %v1988_v43 = vadd.f32 %v881_v40, %v873_v33 }
 0xfbb   :  { %1627 = vtanh.f32 %v1988_v43 }
 0xfc1   :  { %v1628_v29 = vpop.eup %1627 }
 0xfc2   :  { %886 = vrot.lane.b32.xlu0 %v1628_v29, %s1681_s2 }
0x1019   :  { %v937_v46 = vpop.permute.xlu1 %936 }
0x101a   :  { %v939_v35 = vmul.f32 %v937_v46, %v920_v19 }
0x101c   :  { %v960_v47 = vpack.c.bf16 %v939_v35, %v939_v35 }
0x101e   :  { %962 = vrot.lane.b32.xlu0 %v960_v47, %s1682_s5 }
0x1034   :  { %v887_v41 = vpop.permute.xlu0 %886 }
0x1035   :  { %v1993_v48 = vmul.f32 %v887_v41, %v870_v24 }
0x1037   :  { %v940_v49 = vpack.c.bf16 %v1993_v48, %v1993_v48 }
0x1039   :  { %942 = vrot.lane.b32.xlu2 %v940_v49, %s1682_s5 }
0x1090   :  { %v963_v34 = vpop.permute.xlu0 %962 }
0x1091   :  { %1418 = vmatmul.msk.bf16.vlgmr.msra.gmra.mxu1 %vm89_vm1, %v963_v34  ;;  %1420 = vmatmul.msk.bf16.vlgmr.msra.gmra.mxu2 %vm89_vm1, %v963_v34 }
0x1093   :  { %v943_v51 = vpop.permute.xlu2 %942 }
0x1094   :  { %1417 = vmatmul.msk.bf16.vlgmr.msra.gmra.mxu0 %vm89_vm1, %v943_v51 }
0x110e   :  { %v976_v44 = vpop.f32.mrf.mxu1 }
0x1111   :  { %v956_v36 = vpop.f32.mrf.mxu0 }
0x1112   :  { %v957_v53 = vadd.f32 %v2004_v52, %v956_v36 }
0x1114   :  { %v980_v54 = vadd.f32 %v976_v44, %v957_v53  ;;  %v1027_v55 = vpop.f32.mrf.mxu2 }
0x1115   :  { %v1028_v38 = vadd.f32 %v1654_v56, %v1027_v55 }
0x1116   :  { %1629 = vtanh.f32 %v980_v54  ;;  %v978_v4 = vpop.f32.mrf.mxu1  ;;  %v1419_v60 = vmul.f32 -1.442695, %v980_v54 }
0x1117   :  { %1631 = vtanh.f32 %v1028_v38  ;;  %v1421_v59 = vmul.f32 -1.442695, %v1028_v38 }
0x1119   :  { %v958_v39 = vpop.f32.mrf.mxu0  ;;  %1633 = vpow2.f32 %v1421_v59 }
0x111a   :  { %v1516_v39 = vpack.i.bf16 %v1844_v37, %v1968_v50  ;;  %v1502_v37 = vld [vmem:[%s2114_s8 + $0x30] sm:$0xff] }
0x111c   :  { %v1630_v6 = vpop.eup %1629  ;;  %v1029_v57 = vpop.f32.mrf.mxu2 }
0x111d   :  { %v1632_v58 = vpop.eup %1631  ;;  %1003 = vrot.lane.b32.xlu1 %v1630_v6, %s1681_s2 }
0x111e   :  { %1053 = vrot.lane.b32.xlu2 %v1632_v58, %s1681_s2 }
0x111f   :  { %v1634_v2 = vpop.eup %1633 }
0x1120   :  { %v1034_v13 = vadd.f32 1.0, %v1634_v2 }
0x1122   :  { %1635 = vrcp.f32 %v1034_v13  ;;  %v1046_v3 = vand.u32 2147483648, %v1034_v13  ;;  %vm1040_vm10 = vweird.f32 %v1034_v13  ;;  %v1044_v7 = vand.u32 2147483647, %v1034_v13 }
0x1123   :  { %1637 = vpow2.f32 %v1419_v60 }
0x1124   :  { %v1047_v9 = vor.u32 1.1754944e-38, %v1046_v3  ;;  %vm1045_vm12 = vcmp.eq.f32.partialorder %v1044_v7, 8.507059e+37  ;;  %v1500_v3 = vld [vmem:[%s2114_s8 + $0x20] sm:$0xff]  ;;  %v1499_v7 = vld [vmem:[%s2114_s8 + $0x18] sm:$0xff] }
0x1128   :  { %v1636_v5 = vpop.eup %1635 }
0x1129   :  { %v1036_v61 = vmul.f32 %v1636_v5, %v1034_v13  ;;  %v1638_v63 = vpop.eup %1637  ;;  %vm1041_vm9 = vweird.f32 %v1636_v5  ;;  %v1503_v13 = vld [vmem:[%s2114_s8 + $0x38] sm:$0xff] }
0x112a   :  { %v984_v45 = vadd.f32 1.0, %v1638_v63  ;;  %vm1042_vm11 = vmor %vm1040_vm10, %vm1041_vm9  ;;  %1312 = vmatpush.bf16.msrb.mxu1 %v1503_v13 }
0x112b   :  { %v1037_v62 = vsub.f32 1.0, %v1036_v61 }
0x112c   :  { %1639 = vrcp.f32 %v984_v45  ;;  %v996_v19 = vand.u32 2147483648, %v984_v45  ;;  %vm990_vm14 = vweird.f32 %v984_v45  ;;  %v994_v20 = vand.u32 2147483647, %v984_v45 }
0x112d   :  { %v1038_v0 = vmul.f32 %v1636_v5, %v1037_v62 }
0x112e   :  { %v997_v22 = vor.u32 1.1754944e-38, %v996_v19  ;;  %vm995_vm0 = vcmp.eq.f32.partialorder %v994_v20, 8.507059e+37  ;;  %1313 = vmatpush.bf16.msrb.mxu1 %v1502_v37 }
0x112f   :  { %v1039_v1 = vadd.f32 %v1636_v5, %v1038_v0 }
0x1131   :  { %v1043_v8 = vsel %vm1042_vm11, %v1636_v5, %v1039_v1 }
0x1132   :  { %v1048_v11 = vsel %vm1045_vm12, %v1047_v9, %v1043_v8  ;;  %v1640_v12 = vpop.eup %1639  ;;  %v1498_v8 = vld [vmem:[%s2114_s8 + $0x10] sm:$0xff] }
0x1133   :  { %v986_v15 = vmul.f32 %v1640_v12, %v984_v45  ;;  %vm991_vm13 = vweird.f32 %v1640_v12  ;;  %v1051_v26 = vmul.f32 %v1048_v11, %v1983_v30 }
0x1134   :  { %vm992_vm15 = vmor %vm990_vm14, %vm991_vm13 }
0x1135   :  { %v987_v16 = vsub.f32 1.0, %v986_v15 }
0x1137   :  { %v988_v17 = vmul.f32 %v1640_v12, %v987_v16 }
0x1139   :  { %v989_v18 = vadd.f32 %v1640_v12, %v988_v17 }
0x113b   :  { %v993_v21 = vsel %vm992_vm15, %v1640_v12, %v989_v18 }
0x113c   :  { %v998_v24 = vsel %vm995_vm0, %v997_v22, %v993_v21 }
0x113d   :  { %v1001_v40 = vmul.f32 %v998_v24, %v1988_v43 }
0x1178   :  { %v1054_v10 = vpop.permute.xlu2 %1053 }
0x1179   :  { %v1056_v14 = vmul.f32 %v1054_v10, %v1048_v11 }
0x117b   :  { %1058 = vrot.lane.b32.xlu1 %v1056_v14, %s1681_s2 }
0x118f   :  { %v1004_v23 = vpop.permute.xlu1 %1003 }
0x1190   :  { %v1006_v25 = vmul.f32 %v1004_v23, %v998_v24 }
0x1192   :  { %1008 = vrot.lane.b32.xlu0 %v1006_v25, %s1681_s2 }
0x11ed   :  { %v1059_v28 = vpop.permute.xlu1 %1058 }
0x11ee   :  { %v1061_v32 = vadd.f32 %v1059_v28, %v1051_v26  ;;  %v1511_v28 = vld [vmem:[%s2114_s8 + $0x78] sm:$0xff] }
0x11ef   :  { %1325 = vmatpush.bf16.msrb.mxu2 %v1511_v28 }
0x11f0   :  { %1641 = vtanh.f32 %v1061_v32  ;;  %v1510_v32 = vld [vmem:[%s2114_s8 + $0x70] sm:$0xff] }
0x11f3   :  { %1326 = vmatpush.bf16.msrb.mxu2 %v1510_v32 }
0x11f6   :  { %v1642_v33 = vpop.eup %1641 }
0x11f7   :  { %1064 = vrot.lane.b32.xlu0 %v1642_v33, %s1681_s2  ;;  %v1508_v33 = vld [vmem:[%s2114_s8 + $0x60] sm:$0xff] }
0x1204   :  { %v1009_v29 = vpop.permute.xlu0 %1008 }
0x1205   :  { %v2017_v46 = vadd.f32 %v1009_v29, %v1001_v40  ;;  %v1507_v40 = vld [vmem:[%s2114_s8 + $0x58] sm:$0xff]  ;;  %v1506_v29 = vld [vmem:[%s2114_s8 + $0x50] sm:$0xff] }
0x1207   :  { %1643 = vtanh.f32 %v2017_v46 }
0x120d   :  { %v1644_v35 = vpop.eup %1643 }
0x120e   :  { %1014 = vrot.lane.b32.xlu2 %v1644_v35, %s1681_s2 }
0x1268   :  { %v1015_v47 = vpop.permute.xlu2 %1014 }
0x1269   :  { %v1065_v41 = vpop.permute.xlu0 %1064  ;;  %v2021_v49 = vmul.f32 %v1015_v47, %v998_v24 }
0x126a   :  { %v1067_v30 = vmul.f32 %v1065_v41, %v1048_v11  ;;  %v1504_v41 = vld [vmem:[%s2114_s8 + $0x40] sm:$0xff] }
0x126b   :  { %v1068_v34 = vpack.c.bf16 %v2021_v49, %v2021_v49 }
0x126c   :  { %v1088_v51 = vpack.c.bf16 %v1067_v30, %v1067_v30 }
0x126d   :  { %1070 = vrot.lane.b32.xlu1 %v1068_v34, %s1682_s5 }
0x126e   :  { %1090 = vrot.lane.b32.xlu2 %v1088_v51, %s1682_s5 }
0x12c8   :  { %v1091_v43 = vpop.permute.xlu2 %1090 }
0x12c9   :  { %1423 = vmatmul.msk.bf16.vlgmr.msrb.gmra.mxu0 %vm89_vm1, %v1091_v43 }
0x12df   :  { %v1071_v44 = vpop.permute.xlu1 %1070 }
0x12e0   :  { %1422 = vmatmul.msk.bf16.vlgmr.msra.gmra.mxu3 %vm89_vm1, %v1071_v44  ;;  %v1524_v44 = vld [vmem:[%s2115_s9] ss:$0 sm:$0xff] }
0x1346   :  { %v1104_v36 = vpop.f32.mrf.mxu0 }
0x134e   :  { %v1106_v53 = vpop.f32.mrf.mxu0 }
0x1363   :  { %v1084_v54 = vpop.f32.mrf.mxu3 }
0x1364   :  { %v1085_v55 = vadd.f32 %v2004_v52, %v1084_v54 }
0x1366   :  { %v1108_v56 = vadd.f32 %v1104_v36, %v1085_v55 }
0x1368   :  { %1645 = vtanh.f32 %v1108_v56  ;;  %v1424_v6 = vmul.f32 -1.442695, %v1108_v56 }
0x136a   :  { %1647 = vpow2.f32 %v1424_v6 }
0x136b   :  { %v1086_v38 = vpop.f32.mrf.mxu3 }
0x136e   :  { %v1646_v4 = vpop.eup %1645 }
0x136f   :  { %1131 = vrot.lane.b32.xlu0 %v1646_v4, %s1681_s2 }
0x1370   :  { %v1648_v57 = vpop.eup %1647 }
0x1371   :  { %v1112_v58 = vadd.f32 1.0, %v1648_v57 }
0x1373   :  { %1649 = vrcp.f32 %v1112_v58  ;;  %v1124_v60 = vand.u32 2147483648, %v1112_v58  ;;  %vm1118_vm3 = vweird.f32 %v1112_v58  ;;  %v1122_v61 = vand.u32 2147483647, %v1112_v58 }
0x1375   :  { %v1125_v63 = vor.u32 1.1754944e-38, %v1124_v60  ;;  %vm1123_vm5 = vcmp.eq.f32.partialorder %v1122_v61, 8.507059e+37 }
0x1377   :  { %1517 = vrot.lane.b32.xlu0 %v1516_v39, %s1682_s5 }
0x1379   :  { %v1650_v52 = vpop.eup %1649 }
0x137a   :  { %v1114_v59 = vmul.f32 %v1650_v52, %v1112_v58  ;;  %vm1119_vm2 = vweird.f32 %v1650_v52 }
0x137b   :  { %vm1120_vm4 = vmor %vm1118_vm3, %vm1119_vm2 }
0x137c   :  { %v1115_v2 = vsub.f32 1.0, %v1114_v59 }
0x137e   :  { %v1116_v5 = vmul.f32 %v1650_v52, %v1115_v2 }
0x137f   :  { %1151 = vrot.lane.b32.xlu0 %v1874_v42, %s1683_s4  ;;  %v1501_v42 = vld [vmem:[%s2114_s8 + $0x28] sm:$0xff] }
0x1380   :  { %v1117_v50 = vadd.f32 %v1650_v52, %v1116_v5  ;;  %1314 = vmatpush.bf16.msrb.mxu1 %v1501_v42 }
0x1382   :  { %v1121_v62 = vsel %vm1120_vm4, %v1650_v52, %v1117_v50 }
0x1383   :  { %v1126_v45 = vsel %vm1123_vm5, %v1125_v63, %v1121_v62 }
0x1384   :  { %1315 = vmatpush.bf16.msrb.mxu1 %v1500_v3  ;;  %v1129_v9 = vmul.f32 %v1126_v45, %v2017_v46  ;;  %v1505_v46 = vld [vmem:[%s2114_s8 + $0x48] sm:$0xff] }
0x1388   :  { %1316 = vmatpush.bf16.msrb.mxu1 %v1499_v7 }
0x138c   :  { %1317 = vmatpush.bf16.msrb.mxu1 %v1498_v8 }
0x13e1   :  { %v1132_v0 = vpop.permute.xlu0 %1131 }
0x13e2   :  { %v1134_v1 = vmul.f32 %v1132_v0, %v1126_v45 }
0x13e4   :  { %1136 = vrot.lane.b32.xlu1 %v1134_v1, %s1681_s2 }
0x13e9   :  { %v1518_v10 = vpop.permute.xlu0 %1517 }
0x13ea   :  { %v1519_v14 = vunpack.i.l.bf16 %v1518_v10  ;;  %v1520_v19 = vunpack.i.h.bf16 %v1518_v10 }
0x13ec   :  { %1163 = vrot.lane.b32.xlu1 %v1993_v48, %s1683_s4  ;;  %v1497_v48 = vld [vmem:[%s2114_s8 + $0x8] sm:$0xff] }
0x13ed   :  { %1318 = vmatpush.bf16.msrb.mxu1 %v1497_v48 }
0x13f1   :  { %v1152_v18 = vpop.permute.xlu0 %1151 }
0x13f2   :  { %v1170_v20 = vsel %vm89_vm1, %v1520_v19, %v1152_v18 }
0x13f3   :  { %v1172_v21 = vsel %vm1171_vm6, %v1170_v20, %v1905_v27  ;;  %v1509_v27 = vld [vmem:[%s2114_s8 + $0x68] sm:$0xff] }
0x13f4   :  { %1155 = vrot.lane.b32.xlu1 %v1936_v31, %s1681_s2  ;;  %v1496_v31 = vld [vmem:[%s2114_s8] sm:$0xff]  ;;  %1327 = vmatpush.bf16.msrb.mxu2 %v1509_v27 }
0x13f5   :  { %1319 = vmatpush.bf16.msrb.mxu1 %v1496_v31 }
0x13f8   :  { %1328 = vmatpush.bf16.msrb.mxu2 %v1508_v33 }
0x13fc   :  { %1329 = vmatpush.bf16.msrb.mxu2 %v1507_v40 }
0x1400   :  { %1330 = vmatpush.bf16.msrb.mxu2 %v1506_v29 }
0x1404   :  { %1331 = vmatpush.bf16.msrb.mxu2 %v1505_v46 }
0x1408   :  { %1332 = vmatpush.bf16.msrb.mxu2 %v1504_v41 }
0x1456   :  { %v1137_v11 = vpop.permute.xlu1 %1136 }
0x1457   :  { %v1139_v12 = vadd.f32 %v1137_v11, %v1129_v9 }
0x1459   :  { %1651 = vtanh.f32 %v1139_v12 }
0x145e   :  { %v1164_v15 = vpop.permute.xlu1 %1163 }
0x145f   :  { %v1652_v16 = vpop.eup %1651  ;;  %v1175_v17 = vsel %vm89_vm1, %v1519_v14, %v1164_v15  ;;  %vm1338_vm1 = vcmask 254976  }
0x1460   :  { %1142 = vrot.lane.b32.xlu2 %v1652_v16, %s1681_s2  ;;  %v1176_v30 = vsel %vm1171_vm6, %v1175_v17, %v2021_v49 }
0x1466   :  { %v1156_v22 = vpop.permute.xlu1 %1155 }
0x1467   :  { %v1174_v23 = vsel %vm1173_vm7, %v1172_v21, %v1156_v22 }
0x1468   :  { %v1178_v24 = vpack.c.bf16 %v1174_v23, %v1174_v23 }
0x146a   :  { %1320 = vmatmul.bf16.vlgmr.msrb.gmra.mxu1 %v1178_v24 }
0x14ba   :  { %v1143_v25 = vpop.permute.xlu2 %1142 }
0x14bb   :  { %v1145_v26 = vmul.f32 %v1143_v25, %v1126_v45 }
0x14bd   :  { %1167 = vrot.lane.b32.xlu2 %v1145_v26, %s1681_s2 }
0x14e7   :  { %v1321_v35 = vpop.f32.mrf.mxu1 }
0x14e8   :  { %v1322_v36 = vadd.f32 %v1524_v44, %v1321_v35 }
0x14ef   :  { %v1323_v47 = vpop.f32.mrf.mxu1 }
0x1517   :  { %v1168_v34 = vpop.permute.xlu2 %1167 }
0x1518   :  { %v1177_v51 = vsel %vm1173_vm7, %v1176_v30, %v1168_v34 }
0x1519   :  { %v1179_v43 = vpack.c.bf16 %v1177_v51, %v1177_v51 }
0x151b   :  { %1333 = vmatmul.bf16.vlgmr.msrb.gmra.mxu2 %v1179_v43 }
0x159e   :  { %v1334_v53 = vpop.f32.mrf.mxu2 }
0x159f   :  { %v1335_v54 = vadd.f32 %v1334_v53, %v1322_v36 }
0x15a1   :  { %1339 = vst.msk [vmem:[#allocation2] sm:$0x3] %vm1338_vm1, %v1335_v54 }
0x15a2   :  { %1350 = dma.vmem_to_hbm [thread:$0]  %s1346_s0, 32, %s1348_s22, [#allocation3]  }
0x15a6   :  { %v1336_v49 = vpop.f32.mrf.mxu2 }
0x15a7   :  { %1679 = dma.done.wait [#allocation3], 32  }
0x15a8   :  { %1680 = vsyncadd [#allocation3], 4294967264 }
0x15a9   :  { %1355 = vsyncpa [#allocation3], 1 }

</bundles_post_ra>
